<compile_context>
chip_gen: v5e
topology: v5e:2x2
jax: 0.10.0
libtpu: 0.0.40
codegen_flags: <defaults>
</compile_context>

<pallas_src>
import functools

import jax
import jax.numpy as jnp
from jax import lax
from jax.experimental import pallas as pl
from jax.experimental.pallas import tpu as pltpu

# F.rrelu in eval mode == leaky relu with negative slope (lower+upper)/2 = (1/8+1/3)/2
RRELU_SLOPE = (1.0 / 8.0 + 1.0 / 3.0) / 2.0
_NORM_EPS_SQ = 1e-24  # (F.normalize eps=1e-12)^2


def _l2_normalize(x):
    # x * rsqrt(max(sum x^2, eps^2)) == x / max(||x||, eps)   (rsqrt -> EUP slot)
    return x * lax.rsqrt(jnp.maximum(jnp.sum(x * x, axis=-1, keepdims=True), _NORM_EPS_SQ))


# ---------------------------------------------------------------------------
# Fused kernel: entire RecurrentRGCN.forward recurrence.
# Grid: (T,) "arbitrary"; h carried in a VMEM scratch across timesteps.
# ---------------------------------------------------------------------------
def _fused_recurrence_kernel(
    # VMEM inputs
    h0_ref, bsrc_ref, brel_ref, w_ref, rw_ref, wt_ref, bt_ref,
    # output
    hist_ref,
    # VMEM scratch
    h_ref,
    *, num_layers, layer_norm,
):
    t = pl.program_id(0)

    # Load the (already normalized) initial entity embedding into the carry once.
    @pl.when(t == 0)
    def _():
        h_ref[...] = h0_ref[...]

    h_prev = h_ref[...]                 # (N, D)  f32 carry
    b_src = bsrc_ref[0]                 # (N, N)  bf16  norm-weighted adjacency counts
    b_rel = brel_ref[0]                 # (N, R2p) bf16 norm-weighted dst x type counts

    # ---- UnionRGCNLayer stack: agg = B_src @ (cur @ W_l) + B_rel @ (rel @ W_l) ----
    cur = h_prev
    for l in range(num_layers):
        hw = jnp.dot(cur.astype(jnp.bfloat16), w_ref[l],
                     preferred_element_type=jnp.float32)            # (N, D)   MXU
        agg = jnp.dot(b_src, hw.astype(jnp.bfloat16),
                      preferred_element_type=jnp.float32)           # node msgs MXU
        agg = agg + jnp.dot(b_rel, rw_ref[l],
                            preferred_element_type=jnp.float32)     # rel msgs  MXU
        cur = jnp.where(agg >= 0.0, agg, agg * RRELU_SLOPE)         # F.rrelu (eval)

    # ---- time gate (fused) ----
    if layer_norm:
        cur = _l2_normalize(cur)
    logits = jnp.dot(h_prev.astype(jnp.bfloat16), wt_ref[...],
                     preferred_element_type=jnp.float32) + bt_ref[...]
    tw = jax.nn.sigmoid(logits)
    h_new = tw * cur + (1.0 - tw) * h_prev
    h_ref[...] = h_new                   # carry to next timestep (never leaves VMEM)
    hist_ref[...] = h_new[jnp.newaxis]   # (1, N, D) output block for timestep t


def _pick_vmem_limit_bytes():
    # Per-generation scoped-VMEM cap: ~96 MiB on v5e/v6e (128 MiB physical),
    # ~48 MiB on v7x (64 MiB physical). Ample headroom for the tiny toy blocks.
    try:
        cap = pltpu.get_tpu_info().vmem_capacity_bytes
    except Exception:
        cap = 64 * 1024 * 1024
    return int(min(cap * 3 // 4, 96 * 1024 * 1024))


# ---------------------------------------------------------------------------
# Wrapper: graph-structure preprocessing + one fused pallas_call.
# ---------------------------------------------------------------------------
def recurrent_rgcn_forward(params, graphs, *, layer_norm):
    emb_ent = params["emb_ent"]            # (N, D) f32
    emb_rel = params["emb_rel"]            # (2R, D) f32 (returned unchanged)
    w_list = params["rgcn_weights"]        # num_hidden_layers x (D, D)
    wt = params["time_gate_weight"]        # (D, D)
    bt = params["time_gate_bias"]          # (D,)

    N, D = emb_ent.shape
    R2 = emb_rel.shape[0]
    L = len(w_list)
    T = len(graphs)
    assert D % 128 == 0 and N % 8 == 0, "pad h_dim/num_ents to TPU tile sizes"

    # h0 = F.normalize(emb_ent): trivial one-off op outside the kernel.
    h0 = _l2_normalize(emb_ent) if layer_norm else emb_ent

    # ---- host-side graph preprocessing (structure + norms only, no model compute) --
    R2p = ((R2 + 127) // 128) * 128        # pad relation axis to a lane multiple

    b_src_list, b_rel_list = [], []
    for (src, dst, etype, norm) in graphs:
        w_edge = norm[dst]                 # per-edge weight = 1/in_deg(dst)
        bs = jnp.zeros((N, N), jnp.float32).at[dst, src].add(w_edge)
        br = jnp.zeros((N, R2p), jnp.float32).at[dst, etype].add(w_edge)
        b_src_list.append(bs)
        b_rel_list.append(br)
    b_src = jnp.stack(b_src_list).astype(jnp.bfloat16)     # (T, N, N)
    b_rel = jnp.stack(b_rel_list).astype(jnp.bfloat16)     # (T, N, R2p)

    # rW_l = emb_rel @ W_l is timestep-invariant: compute once for all layers.
    w_stack_f32 = jnp.stack(w_list)                        # (L, D, D)
    rel_p = jnp.zeros((R2p, D), jnp.float32).at[:R2].set(emb_rel)
    rw_stack = jnp.einsum("rd,lde->lre", rel_p, w_stack_f32)   # (L, R2p, D)

    # bf16 MXU operands; accumulation stays f32 inside the kernel.
    w_stack = w_stack_f32.astype(jnp.bfloat16)
    rw_bf16 = rw_stack.astype(jnp.bfloat16)
    wt_bf16 = wt.astype(jnp.bfloat16)
    bt2d = bt.reshape(1, D).astype(jnp.float32)

    kernel = functools.partial(_fused_recurrence_kernel,
                               num_layers=L, layer_norm=layer_norm)

    grid_spec = pltpu.PrefetchScalarGridSpec(
        num_scalar_prefetch=0,
        grid=(T,),
        in_specs=[
            pl.BlockSpec((N, D), lambda t: (0, 0)),           # h0 (resident)
            pl.BlockSpec((1, N, N), lambda t: (t, 0, 0)),     # B_src per timestep
            pl.BlockSpec((1, N, R2p), lambda t: (t, 0, 0)),   # B_rel per timestep
            pl.BlockSpec((L, D, D), lambda t: (0, 0, 0)),     # W_neighbor stack (resident)
            pl.BlockSpec((L, R2p, D), lambda t: (0, 0, 0)),   # emb_rel @ W stack (resident)
            pl.BlockSpec((D, D), lambda t: (0, 0)),           # time_gate_weight
            pl.BlockSpec((1, D), lambda t: (0, 0)),           # time_gate_bias
        ],
        out_specs=pl.BlockSpec((1, N, D), lambda t: (t, 0, 0)),   # h per timestep
        scratch_shapes=[pltpu.VMEM((N, D), jnp.float32)],         # h carried across t
    )

    hist = pl.pallas_call(
        kernel,
        grid_spec=grid_spec,
        out_shape=jax.ShapeDtypeStruct((T, N, D), jnp.float32),
        compiler_params=pltpu.CompilerParams(
            dimension_semantics=("arbitrary",),      # t carries h -> sequential
            vmem_limit_bytes=_pick_vmem_limit_bytes(),
        ),
    )(h0, b_src, b_rel, w_stack, rw_bf16, wt_bf16, bt2d)

    # torch: history_embs = [self.h]; then one append per timestep (length T+1)
    history_embs = [h0] + [hist[i] for i in range(T)]
    gate_list, degree_list = [], []
    return history_embs, emb_rel, gate_list, degree_list


# ---------------------------------------------------------------------------
# Pure-JAX f32 reference (mirrors the PyTorch forward) for correctness checking.
# ---------------------------------------------------------------------------
def reference_forward(params, graphs, *, layer_norm):
    emb_ent = params["emb_ent"]
    emb_rel = params["emb_rel"]
    n = emb_ent.shape[0]
    h = _l2_normalize(emb_ent) if layer_norm else emb_ent
    hist = [h]
    for (src, dst, etype, norm) in graphs:
        cur = h
        for w in params["rgcn_weights"]:
            msg = (cur[src] + emb_rel[etype]) @ w
            agg = jax.ops.segment_sum(msg, dst, num_segments=n)
            x = agg * norm[:, None]
            cur = jnp.where(x >= 0.0, x, x * RRELU_SLOPE)
        curn = _l2_normalize(cur) if layer_norm else cur
        tw = jax.nn.sigmoid(h @ params["time_gate_weight"] + params["time_gate_bias"])
        h = tw * curn + (1.0 - tw) * h
        hist.append(h)
    return hist


# ---------------------------------------------------------------------------
# Deterministic parameter / input construction
# ---------------------------------------------------------------------------
def xavier_uniform(key, shape, gain=1.0):
    fan_out, fan_in = shape
    bound = gain * (6.0 / (fan_in + fan_out)) ** 0.5
    return jax.random.uniform(key, shape, jnp.float32, -bound, bound)


def xavier_normal(key, shape):
    fan_out, fan_in = shape
    std = (2.0 / (fan_in + fan_out)) ** 0.5
    return jax.random.normal(key, shape, jnp.float32) * std


if __name__ == "__main__":
    num_ents = 128
    num_rels = 8                    # -> 16 relation embeddings (forward + inverse)
    h_dim = 128
    num_hidden_layers = 2
    seq_len = 3
    edge_counts = [256, 192, 224]   # ragged graphs (absorbed into B, no masking needed)
    layer_norm = True

    key = jax.random.PRNGKey(0)
    k_rel, k_ent, k_tg, k_rgcn, k_graph = jax.random.split(key, 5)

    gain_relu = 2.0 ** 0.5
    params = {
        "emb_rel": xavier_normal(k_rel, (2 * num_rels, h_dim)),
        "emb_ent": jax.random.normal(k_ent, (num_ents, h_dim), jnp.float32),
        "time_gate_weight": xavier_uniform(k_tg, (h_dim, h_dim), gain=gain_relu),
        "time_gate_bias": jnp.zeros((h_dim,), jnp.float32),
        "rgcn_weights": [
            xavier_uniform(jax.random.fold_in(k_rgcn, li), (h_dim, h_dim), gain=gain_relu)
            for li in range(num_hidden_layers)
        ],
    }

    # Synthetic DGL-style graphs: (src, dst, edge_type, per-node norm = 1/in_deg)
    graphs = []
    for t, n_edges in enumerate(edge_counts):
        gk = jax.random.fold_in(k_graph, t)
        k1, k2, k3 = jax.random.split(gk, 3)
        src = jax.random.randint(k1, (n_edges,), 0, num_ents)
        dst = jax.random.randint(k2, (n_edges,), 0, num_ents)
        etype = jax.random.randint(k3, (n_edges,), 0, 2 * num_rels)
        in_deg = jax.ops.segment_sum(jnp.ones((n_edges,), jnp.float32), dst,
                                     num_segments=num_ents)
        norm = 1.0 / jnp.maximum(in_deg, 1.0)          # (N,), 0-degree -> 1
        graphs.append((src, dst, etype, norm))

    history_embs, r_emb, gate_list, degree_list = recurrent_rgcn_forward(
        params, graphs, layer_norm=layer_norm)
    jax.block_until_ready(history_embs)

    assert len(history_embs) == seq_len + 1            # leading initial h, like torch
    assert history_embs[-1].shape == (num_ents, h_dim)
    assert r_emb.shape == (2 * num_rels, h_dim)

    ref_embs = reference_forward(params, graphs, layer_norm=layer_norm)
    for got, want in zip(history_embs, ref_embs):
        err = float(jnp.max(jnp.abs(got - want)))
        assert err < 5e-2, f"mismatch vs f32 reference: max|diff|={err}"

    print("KERNEL_OK")
</pallas_src>

<mosaic_0001>
module attributes {stable_mosaic.version = 11 : i64} {
  func.func @_fused_recurrence_kernel(%arg0: i32, %arg1: memref<128x128xf32, #tpu.memory_space<vmem>>, %arg2: memref<1x128x128xbf16, #tpu.memory_space<vmem>>, %arg3: memref<1x128x128xbf16, #tpu.memory_space<vmem>>, %arg4: memref<2x128x128xbf16, #tpu.memory_space<vmem>>, %arg5: memref<2x128x128xbf16, #tpu.memory_space<vmem>>, %arg6: memref<128x128xbf16, #tpu.memory_space<vmem>>, %arg7: memref<1x128xf32, #tpu.memory_space<vmem>>, %arg8: memref<1x128x128xf32, #tpu.memory_space<vmem>>, %arg9: memref<128x128xf32, #tpu.memory_space<vmem>>) attributes {dimension_semantics = [#tpu.dimension_semantics<arbitrary>], iteration_bounds = array<i64: 3>, scalar_prefetch = 0 : i64, scratch_operands = 1 : i64, tpu.core_type = #tpu.core_type<tc>, window_params = [{pipeline_mode = #tpu.pipeline_mode<synchronous>, transform_indices = @transform_0, window_bounds = array<i64: 128, 128>}, {transform_indices = @transform_1, window_bounds = array<i64: 1, 128, 128>}, {transform_indices = @transform_2, window_bounds = array<i64: 1, 128, 128>}, {pipeline_mode = #tpu.pipeline_mode<synchronous>, transform_indices = @transform_3, window_bounds = array<i64: 2, 128, 128>}, {pipeline_mode = #tpu.pipeline_mode<synchronous>, transform_indices = @transform_4, window_bounds = array<i64: 2, 128, 128>}, {pipeline_mode = #tpu.pipeline_mode<synchronous>, transform_indices = @transform_5, window_bounds = array<i64: 128, 128>}, {pipeline_mode = #tpu.pipeline_mode<synchronous>, transform_indices = @transform_6, window_bounds = array<i64: 1, 128>}, {transform_indices = @transform_7, window_bounds = array<i64: 1, 128, 128>}]} {
    %c0_i32 = arith.constant 0 : i32
    %0 = arith.cmpi eq, %arg0, %c0_i32 : i32
    %1 = arith.extui %0 : i1 to i32
    %c0_i32_0 = arith.constant 0 : i32
    %2 = arith.cmpi ne, %1, %c0_i32_0 : i32
    scf.if %2 {
      %c0_42 = arith.constant 0 : index
      %c0_43 = arith.constant 0 : index
      %65 = vector.load %arg1[%c0_42, %c0_43] : memref<128x128xf32, #tpu.memory_space<vmem>>, vector<128x128xf32>
      %c0_44 = arith.constant 0 : index
      %c0_45 = arith.constant 0 : index
      %66 = vector.load %arg9[%c0_44, %c0_45] : memref<128x128xf32, #tpu.memory_space<vmem>>, vector<128x128xf32>
      tpu.vector_store %arg9[%c0_44, %c0_45], %65 {strides = array<i32>} : memref<128x128xf32, #tpu.memory_space<vmem>>, vector<128x128xf32>,
    } else {
    }
    %c0 = arith.constant 0 : index
    %c0_1 = arith.constant 0 : index
    %3 = vector.load %arg9[%c0, %c0_1] : memref<128x128xf32, #tpu.memory_space<vmem>>, vector<128x128xf32>
    %c0_2 = arith.constant 0 : index
    %c0_3 = arith.constant 0 : index
    %c0_4 = arith.constant 0 : index
    %4 = vector.load %arg2[%c0_2, %c0_3, %c0_4] : memref<1x128x128xbf16, #tpu.memory_space<vmem>>, vector<1x128x128xbf16>
    %5 = vector.shape_cast %4 : vector<1x128x128xbf16> to vector<128x128xbf16>
    %c0_5 = arith.constant 0 : index
    %c0_6 = arith.constant 0 : index
    %c0_7 = arith.constant 0 : index
    %6 = vector.load %arg3[%c0_5, %c0_6, %c0_7] : memref<1x128x128xbf16, #tpu.memory_space<vmem>>, vector<1x128x128xbf16>
    %7 = vector.shape_cast %6 : vector<1x128x128xbf16> to vector<128x128xbf16>
    %8 = arith.truncf %3 : vector<128x128xf32> to vector<128x128xbf16>
    %c0_8 = arith.constant 0 : index
    %c0_9 = arith.constant 0 : index
    %c0_10 = arith.constant 0 : index
    %9 = vector.load %arg4[%c0_8, %c0_9, %c0_10] : memref<2x128x128xbf16, #tpu.memory_space<vmem>>, vector<1x128x128xbf16>
    %10 = vector.shape_cast %9 : vector<1x128x128xbf16> to vector<128x128xbf16>
    %cst = arith.constant dense<0.000000e+00> : vector<128x128xf32>
    %11 = tpu.matmul %8, %10, %cst {dimension_numbers = #tpu.dot_dimension_numbers<[1], [0], [0], [1], [0, 0, 1, 1], [], []>} : vector<128x128xbf16>, vector<128x128xbf16>, vector<128x128xf32> -> vector<128x128xf32>
    %12 = arith.truncf %11 : vector<128x128xf32> to vector<128x128xbf16>
    %cst_11 = arith.constant dense<0.000000e+00> : vector<128x128xf32>
    %13 = tpu.matmul %5, %12, %cst_11 {dimension_numbers = #tpu.dot_dimension_numbers<[1], [0], [0], [1], [0, 0, 1, 1], [], []>} : vector<128x128xbf16>, vector<128x128xbf16>, vector<128x128xf32> -> vector<128x128xf32>
    %c0_12 = arith.constant 0 : index
    %c0_13 = arith.constant 0 : index
    %c0_14 = arith.constant 0 : index
    %14 = vector.load %arg5[%c0_12, %c0_13, %c0_14] : memref<2x128x128xbf16, #tpu.memory_space<vmem>>, vector<1x128x128xbf16>
    %15 = vector.shape_cast %14 : vector<1x128x128xbf16> to vector<128x128xbf16>
    %cst_15 = arith.constant dense<0.000000e+00> : vector<128x128xf32>
    %16 = tpu.matmul %7, %15, %cst_15 {dimension_numbers = #tpu.dot_dimension_numbers<[1], [0], [0], [1], [0, 0, 1, 1], [], []>} : vector<128x128xbf16>, vector<128x128xbf16>, vector<128x128xf32> -> vector<128x128xf32>
    %17 = arith.addf %13, %16 : vector<128x128xf32>
    %cst_16 = arith.constant 0.000000e+00 : f32
    %18 = vector.broadcast %cst_16 : f32 to vector<128x128xf32>
    %19 = arith.cmpf oge, %17, %18 : vector<128x128xf32>
    %cst_17 = arith.constant 0.229166672 : f32
    %20 = vector.broadcast %cst_17 : f32 to vector<128x128xf32>
    %21 = arith.mulf %17, %20 : vector<128x128xf32>
    %22 = arith.select %19, %17, %21 : vector<128x128xi1>, vector<128x128xf32>
    %23 = arith.truncf %22 : vector<128x128xf32> to vector<128x128xbf16>
    %c1 = arith.constant 1 : index
    %c0_18 = arith.constant 0 : index
    %c0_19 = arith.constant 0 : index
    %24 = vector.load %arg4[%c1, %c0_18, %c0_19] : memref<2x128x128xbf16, #tpu.memory_space<vmem>>, vector<1x128x128xbf16>
    %25 = vector.shape_cast %24 : vector<1x128x128xbf16> to vector<128x128xbf16>
    %cst_20 = arith.constant dense<0.000000e+00> : vector<128x128xf32>
    %26 = tpu.matmul %23, %25, %cst_20 {dimension_numbers = #tpu.dot_dimension_numbers<[1], [0], [0], [1], [0, 0, 1, 1], [], []>} : vector<128x128xbf16>, vector<128x128xbf16>, vector<128x128xf32> -> vector<128x128xf32>
    %27 = arith.truncf %26 : vector<128x128xf32> to vector<128x128xbf16>
    %cst_21 = arith.constant dense<0.000000e+00> : vector<128x128xf32>
    %28 = tpu.matmul %5, %27, %cst_21 {dimension_numbers = #tpu.dot_dimension_numbers<[1], [0], [0], [1], [0, 0, 1, 1], [], []>} : vector<128x128xbf16>, vector<128x128xbf16>, vector<128x128xf32> -> vector<128x128xf32>
    %c1_22 = arith.constant 1 : index
    %c0_23 = arith.constant 0 : index
    %c0_24 = arith.constant 0 : index
    %29 = vector.load %arg5[%c1_22, %c0_23, %c0_24] : memref<2x128x128xbf16, #tpu.memory_space<vmem>>, vector<1x128x128xbf16>
    %30 = vector.shape_cast %29 : vector<1x128x128xbf16> to vector<128x128xbf16>
    %cst_25 = arith.constant dense<0.000000e+00> : vector<128x128xf32>
    %31 = tpu.matmul %7, %30, %cst_25 {dimension_numbers = #tpu.dot_dimension_numbers<[1], [0], [0], [1], [0, 0, 1, 1], [], []>} : vector<128x128xbf16>, vector<128x128xbf16>, vector<128x128xf32> -> vector<128x128xf32>
    %32 = arith.addf %28, %31 : vector<128x128xf32>
    %cst_26 = arith.constant 0.000000e+00 : f32
    %33 = vector.broadcast %cst_26 : f32 to vector<128x128xf32>
    %34 = arith.cmpf oge, %32, %33 : vector<128x128xf32>
    %cst_27 = arith.constant 0.229166672 : f32
    %35 = vector.broadcast %cst_27 : f32 to vector<128x128xf32>
    %36 = arith.mulf %32, %35 : vector<128x128xf32>
    %37 = arith.select %34, %32, %36 : vector<128x128xi1>, vector<128x128xf32>
    %38 = arith.mulf %37, %37 : vector<128x128xf32>
    %cst_28 = arith.constant dense<0.000000e+00> : vector<128xf32>
    %39 = vector.multi_reduction <add>, %38, %cst_28 [1] : vector<128x128xf32> to vector<128xf32>
    %40 = vector.shape_cast %39 : vector<128xf32> to vector<128x1xf32>
    %cst_29 = arith.constant 1.000000e-24 : f32
    %41 = vector.broadcast %cst_29 : f32 to vector<128x1xf32>
    %42 = arith.maximumf %40, %41 : vector<128x1xf32>
    %43 = math.rsqrt %42 : vector<128x1xf32>
    %44 = vector.broadcast %43 : vector<128x1xf32> to vector<128x128xf32>
    %45 = arith.mulf %37, %44 : vector<128x128xf32>
    %46 = arith.truncf %3 : vector<128x128xf32> to vector<128x128xbf16>
    %c0_30 = arith.constant 0 : index
    %c0_31 = arith.constant 0 : index
    %47 = vector.load %arg6[%c0_30, %c0_31] : memref<128x128xbf16, #tpu.memory_space<vmem>>, vector<128x128xbf16>
    %cst_32 = arith.constant dense<0.000000e+00> : vector<128x128xf32>
    %48 = tpu.matmul %46, %47, %cst_32 {dimension_numbers = #tpu.dot_dimension_numbers<[1], [0], [0], [1], [0, 0, 1, 1], [], []>} : vector<128x128xbf16>, vector<128x128xbf16>, vector<128x128xf32> -> vector<128x128xf32>
    %c0_33 = arith.constant 0 : index
    %c0_34 = arith.constant 0 : index
    %49 = vector.load %arg7[%c0_33, %c0_34] : memref<1x128xf32, #tpu.memory_space<vmem>>, vector<1x128xf32>
    %50 = vector.broadcast %49 : vector<1x128xf32> to vector<128x128xf32>
    %51 = arith.addf %48, %50 : vector<128x128xf32>
    %52 = arith.negf %51 : vector<128x128xf32>
    %53 = math.exp %52 : vector<128x128xf32>
    %cst_35 = arith.constant 1.000000e+00 : f32
    %54 = vector.broadcast %cst_35 : f32 to vector<128x128xf32>
    %55 = arith.addf %54, %53 : vector<128x128xf32>
    %56 = arith.divf %54, %55 : vector<128x128xf32>
    %57 = arith.mulf %56, %45 : vector<128x128xf32>
    %cst_36 = arith.constant 1.000000e+00 : f32
    %58 = vector.broadcast %cst_36 : f32 to vector<128x128xf32>
    %59 = arith.subf %58, %56 : vector<128x128xf32>
    %60 = arith.mulf %59, %3 : vector<128x128xf32>
    %61 = arith.addf %57, %60 : vector<128x128xf32>
    %c0_37 = arith.constant 0 : index
    %c0_38 = arith.constant 0 : index
    %62 = vector.load %arg9[%c0_37, %c0_38] : memref<128x128xf32, #tpu.memory_space<vmem>>, vector<128x128xf32>
    tpu.vector_store %arg9[%c0_37, %c0_38], %61 {strides = array<i32>} : memref<128x128xf32, #tpu.memory_space<vmem>>, vector<128x128xf32>,
    %63 = vector.shape_cast %61 : vector<128x128xf32> to vector<1x128x128xf32>
    %c0_39 = arith.constant 0 : index
    %c0_40 = arith.constant 0 : index
    %c0_41 = arith.constant 0 : index
    %64 = vector.load %arg8[%c0_39, %c0_40, %c0_41] : memref<1x128x128xf32, #tpu.memory_space<vmem>>, vector<1x128x128xf32>
    tpu.vector_store %arg8[%c0_39, %c0_40, %c0_41], %63 {strides = array<i32>} : memref<1x128x128xf32, #tpu.memory_space<vmem>>, vector<1x128x128xf32>,
    return
  }
  func.func @transform_0(%arg0: i32) -> (i32, i32) {
    %c0_i32 = arith.constant 0 : i32
    %c0_i32_0 = arith.constant 0 : i32
    %c0_i32_1 = arith.constant 0 : i32
    return %c0_i32, %c0_i32_0 : i32, i32
  }
  func.func @transform_1(%arg0: i32) -> (i32, i32, i32) {
    %c0_i32 = arith.constant 0 : i32
    %c0_i32_0 = arith.constant 0 : i32
    %c0_i32_1 = arith.constant 0 : i32
    return %arg0, %c0_i32, %c0_i32_0 : i32, i32, i32
  }
  func.func @transform_2(%arg0: i32) -> (i32, i32, i32) {
    %c0_i32 = arith.constant 0 : i32
    %c0_i32_0 = arith.constant 0 : i32
    %c0_i32_1 = arith.constant 0 : i32
    return %arg0, %c0_i32, %c0_i32_0 : i32, i32, i32
  }
  func.func @transform_3(%arg0: i32) -> (i32, i32, i32) {
    %c0_i32 = arith.constant 0 : i32
    %c0_i32_0 = arith.constant 0 : i32
    %c0_i32_1 = arith.constant 0 : i32
    %c0_i32_2 = arith.constant 0 : i32
    return %c0_i32, %c0_i32_0, %c0_i32_1 : i32, i32, i32
  }
  func.func @transform_4(%arg0: i32) -> (i32, i32, i32) {
    %c0_i32 = arith.constant 0 : i32
    %c0_i32_0 = arith.constant 0 : i32
    %c0_i32_1 = arith.constant 0 : i32
    %c0_i32_2 = arith.constant 0 : i32
    return %c0_i32, %c0_i32_0, %c0_i32_1 : i32, i32, i32
  }
  func.func @transform_5(%arg0: i32) -> (i32, i32) {
    %c0_i32 = arith.constant 0 : i32
    %c0_i32_0 = arith.constant 0 : i32
    %c0_i32_1 = arith.constant 0 : i32
    return %c0_i32, %c0_i32_0 : i32, i32
  }
  func.func @transform_6(%arg0: i32) -> (i32, i32) {
    %c0_i32 = arith.constant 0 : i32
    %c0_i32_0 = arith.constant 0 : i32
    %c0_i32_1 = arith.constant 0 : i32
    return %c0_i32, %c0_i32_0 : i32, i32
  }
  func.func @transform_7(%arg0: i32) -> (i32, i32, i32) {
    %c0_i32 = arith.constant 0 : i32
    %c0_i32_0 = arith.constant 0 : i32
    %c0_i32_1 = arith.constant 0 : i32
    return %arg0, %c0_i32, %c0_i32_0 : i32, i32, i32
  }
}

</mosaic_0001>

<bundles_post_ra>
// kernel: tpu_custom_call.1
= control target key start
LH: loop header
LB: loop body
LE: loop exit
PB: predicated region body
PF: predicated region fallthrough
CT: control target
= control target key end

     0   :  { %s4035_s0 = inlined_call_operand.hbm [shape: f32[128,128], index: 0, kind: input, shape index: {}]   ;;  %s4036_s1 = inlined_call_operand.hbm [shape: bf16[3,128,128], index: 1, kind: input, shape index: {}]   ;;  %s4037_s2 = inlined_call_operand.hbm [shape: bf16[3,128,128], index: 2, kind: input, shape index: {}]   ;;  %s4038_s3 = inlined_call_operand.hbm [shape: bf16[2,128,128], index: 3, kind: input, shape index: {}]   ;;  %s4039_s4 = inlined_call_operand.hbm [shape: bf16[2,128,128], index: 4, kind: input, shape index: {}]   ;;  %s4040_s5 = inlined_call_operand.hbm [shape: bf16[128,128], index: 5, kind: input, shape index: {}]   ;;  %s4041_s6 = inlined_call_operand.vmem [shape: f32[1,128], index: 6, kind: input, shape index: {}]   ;;  %s4042_s7 = inlined_call_operand.hbm [shape: f32[3,128,128], index: 7, kind: output, shape index: {}]  }
   0x1   :  { %4052 = sst [smem:[#allocation24_spill]] %s4035_s0 }
   0x2   :  { %4053 = sst [smem:[#allocation25_spill]] %s4036_s1 }
   0x3   :  { %4054 = sst [smem:[#allocation26_spill]] %s4038_s3 }
   0x4   :  { %12 = vsyncpa [#allocation4], 0 }
   0x5   :  { %13 = vsyncpa [#allocation7], 0 }
   0x6   :  { %15 = vsyncpa [#allocation7 + $0x1], 0 }
   0x7   :  { %16 = vsyncpa [#allocation10], 0 }
   0x8   :  { %17 = vsyncpa [#allocation13], 0 }
   0x9   :  { %18 = vsyncpa [#allocation5], 0 }
   0xa   :  { %20 = vsyncpa [#allocation5 + $0x1], 0  ;;  %s3043_s24 = smov 0   ;;  %s3045_s25 = smov 0  }
   0xb   :  { %s3047_s26 = smov 0   ;;  %s3049_s27 = smov 0  }
   0xc LB: > { %4055 = sst [smem:[#allocation20_spill]] %s2987_s26  ;;  %s3064_s28 = sadd.s32 4294967295, %s2991_s27   ;;  %s2991_s27 = sphi %s3049_s27, %s4128_s27   ;;  %s2987_s26 = sphi %s3047_s26, %s4130_s26   ;;  %s2983_s25 = sphi %s3045_s25, %s4132_s25   ;;  %s2979_s24 = sphi %s3043_s24, %s4131_s24  }
   0xd   : > { %s2172_s29 = sadd.s32 4294967294, %s2991_s27   ;;  %p67_p0 = scmp.ne.s32.totalorder %s2983_s25, %s2979_s24 }
   0xe   : > { %p4051_p1 = scmp.eq.s32.totalorder %s3064_s28, 0  ;;  %p201_p2 = scmp.eq.s32.totalorder %s3064_s28, 2 }
   0xf   : > { %p207_p3 = scmp.eq.s32.totalorder %s2172_s29, 2  ;;  %p2173_p5 = scmp.ge.s32.totalorder %s2991_s27, 1 }
  0x10   : > { %p3073_p4 = por %p4051_p1, %p67_p0  ;;  %p214_p7 = scmp.lt.s32.totalorder %s2991_s27, 4 }
  0x11   : > { %p3078_p6 = por %p207_p3, %p67_p0  ;;  %s4059_s3 = sld [smem:[#allocation26_spill]] }
  0x12   : > { %p3087_p9 = pnand %p2173_p5, %p214_p7  ;;  %s2993_s13 = smov [#allocation9]  }
  0x13   : > { %s4057_s8 = scalar_select %p3078_p6, 1, 0 }
  0x14   : > { %p2544_p10 = pneg %p3087_p9  ;;  %s241_s14 = sshll.u32 %s2993_s13, 4  ;;  %s242_s14 = int_to_ptr.vmem [resolvable:$true] %s241_s14 }
  0x15   : > { %4058 = sst [smem:[#allocation21_spill]] %s4057_s8  ;;  %s3100_s16 = sadd.s32 1, %s2991_s27  }
  0x16   : > { %p3095_p11 = pnand %p2544_p10, %p4051_p1  ;;  %4062 = sst [smem:[#allocation22_spill]] %s3100_s16 }
  0x17   : > { %s239_s11 = sshll.u32 %s4059_s3, 4  ;;  %s4043_s17 = smov 64   ;;  %s240_s11 = int_to_ptr.hbm [resolvable:$true] %s239_s11 }
  0x18   : > { %s4045_s18 = smov 4   ;;  %s51_s19 = ssub.s32 %s2991_s27, %s3100_s16 }
  0x19   : > { %2550 = dma.hbm_to_vmem [thread:$0]  (!%p3095_p11), %s240_s11, 2048, %s242_s14, [#allocation10], %s4043_s17, %s4043_s17, %s4045_s18  }
  0x1a   : > { %s54_s20 = sadd.s32 1, %s2987_s26  ;;  %p52_p12 = scmp.eq.s32.totalorder %s51_s19, 0 }
  0x1b   : > { %p61_p13 = scmp.ne.s32.totalorder %s2987_s26, %s2983_s25  ;;  %p62_p0 = scmp.eq.s32.totalorder %s2991_s27, 0 }
  0x1c   : > { %p2572_p3 = scmp.lt.s32.totalorder %s2991_s27, 3  ;;  %s286_s23 = sand.u32 1, %s2991_s27  }
  0x1d   : > { %s3115_s21 = scalar_select %p52_p12, %s2987_s26, %s54_s20  }
  0x1e   : > { %p63_p5 = por %p62_p0, %p61_p13  ;;  %p3119_p7 = por %p201_p2, %p61_p13 }
  0x1f   : > { %4063 = sst [smem:[#allocation23_spill]] %s3115_s21  ;;  %s288_s29 = sand.u32 1, %s2987_s26  }
  0x20   : > { %s3125_s9 = sshll.u32 %s288_s29, 6  ;;  %s2439_s10 = sshll.u32 %s2991_s27, 6 }
  0x21   : > { %s4065_s1 = sld [smem:[#allocation25_spill]]  ;;  %s290_s19 = scalar_lea.vmem [#allocation6], %s3125_s9 }
  0x22   : > { %s298_s17 = sshll.u32 %s290_s19, 4  ;;  %p3134_p2 = pnand %p2572_p3, %p63_p5  ;;  %s299_s17 = int_to_ptr.vmem [resolvable:$true] %s298_s17 }
  0x23   : > { %s317_s29 = scalar_lea.hbm %s4037_s2, %s2439_s10  ;;  %s3141_s16 = scalar_lea.sflag [#allocation7], %s286_s23 }
  0x24   : > { %s318_s26 = sshll.u32 %s317_s29, 4  ;;  %p2767_p12 = pneg %p3134_p2  ;;  %s3160_s26 = int_to_ptr.hbm [resolvable:$true] %s318_s26 }
  0x27   : > { %s295_s14 = scalar_lea.hbm %s4065_s1, %s2439_s10  ;;  %s2770_s3 = scalar_lea.hbm %s4065_s1, 192 }
  0x28   : > { %s296_s20 = sshll.u32 %s295_s14, 4  ;;  %s297_s20 = int_to_ptr.hbm [resolvable:$true] %s296_s20 }
  0x29   : > { %s2763_s11 = sshra.s32 %s297_s20, 4  ;;  %s2764_s11 = int_to_ptr.hbm [resolvable:$true] %s2763_s11 }
  0x2a   : > { %s2765_s13 = scalar_lea.hbm %s2764_s11, 64  ;;  %p2771_p3 = scmp.lt.s32.totalorder %s2764_s11, %s4065_s1 }
  0x2b   : > { %p2766_p10 = scmp.ne.s32.totalorder %s2764_s11, %s2765_s13  ;;  %p2772_p5 = scmp.lt.s32.totalorder %s2770_s3, %s2765_s13 }
  0x2d   : > { %p2768_p13 = pnand %p2767_p12, %p2766_p10  ;;  %p2773_p8 = por %p2772_p5, %p2771_p3 }
  0x2f   : > { %p2769_p0 = pneg %p2768_p13 }
  0x31   : > { %p2774_p1 = pnand %p2773_p8, %p2769_p0 }
  0x33   : > { %2777 = shalt.err (!%p2774_p1)
}
  0x34   : > { %s4067_s23 = smov 4   ;;  %s4068_s10 = smov 64  }
  0x35   : > { %2560 = dma.hbm_to_vmem [thread:$0]  (!%p3134_p2), %s297_s20, 1024, %s299_s17, %s3141_s16, %s4068_s10, %s4068_s10, %s4067_s23  }
  0x36   : > { %s312_s29 = scalar_lea.vmem [#allocation8], %s3125_s9  ;;  %s4069_s0 = sld [smem:[#allocation24_spill]] }
  0x37   : > { %s3163_s14 = sshll.u32 %s312_s29, 4  ;;  %s2996_s19 = smov [#allocation3]   ;;  %s321_s14 = int_to_ptr.vmem [resolvable:$true] %s3163_s14 }
  0x38   : > { %s227_s3 = sshll.u32 %s2996_s19, 4  ;;  %s2997_s21 = smov 128   ;;  %s228_s3 = int_to_ptr.vmem [resolvable:$true] %s227_s3 }
  0x39   : > { %s2998_s1 = smov 8   ;;  %s253_s20 = sshll.u32 %s4039_s4, 4  ;;  %s254_s20 = int_to_ptr.hbm [resolvable:$true] %s253_s20 }
  0x3a   : > { %s2999_s29 = smov [#allocation11]   ;;  %s267_s19 = sshll.u32 %s4040_s5, 4  ;;  %s268_s19 = int_to_ptr.hbm [resolvable:$true] %s267_s19 }
  0x3b   : > { %s255_s8 = sshll.u32 %s2999_s29, 4  ;;  %s2890_s9 = scalar_lea.hbm %s4037_s2, 192  ;;  %s256_s8 = int_to_ptr.vmem [resolvable:$true] %s255_s8 }
  0x3c   : > { %s225_s13 = sshll.u32 %s4069_s0, 4  ;;  %s226_s13 = int_to_ptr.hbm [resolvable:$true] %s225_s13 }
  0x3d   : > { %2547 = dma.hbm_to_vmem [thread:$0]  (!%p3095_p11), %s226_s13, 2048, %s228_s3, [#allocation4], %s2997_s21, %s2997_s21, %s2998_s1  }
  0x3e   : > { %2553 = dma.hbm_to_vmem [thread:$0]  (!%p3095_p11), %s254_s20, 2048, %s256_s8, [#allocation10], %s4068_s10, %s4068_s10, %s4067_s23  }
  0x3f   : > { %s3000_s1 = smov [#allocation12]   ;;  %s2883_s3 = sshra.s32 %s3160_s26, 4  ;;  %s2884_s3 = int_to_ptr.hbm [resolvable:$true] %s2883_s3 }
  0x40   : > { %s269_s13 = sshll.u32 %s3000_s1, 4  ;;  %s2885_s21 = scalar_lea.hbm %s2884_s3, 64  ;;  %s270_s13 = int_to_ptr.vmem [resolvable:$true] %s269_s13 }
  0x41   : > { %2556 = dma.hbm_to_vmem [thread:$0]  (!%p3095_p11), %s268_s19, 1024, %s270_s13, [#allocation13], %s4068_s10, %s4068_s10, %s4067_s23  }
  0x42   : > { %p2886_p1 = scmp.ne.s32.totalorder %s2884_s3, %s2885_s21  ;;  %p2891_p13 = scmp.lt.s32.totalorder %s2884_s3, %s4037_s2 }
  0x43   : > { %p2892_p0 = scmp.lt.s32.totalorder %s2890_s9, %s2885_s21 }
  0x44   : > { %p2888_p8 = pnand %p2886_p1, %p2767_p12 }
  0x45   : > { %p2893_p3 = por %p2892_p0, %p2891_p13 }
  0x46   : > { %p2889_p10 = pneg %p2888_p8 }
  0x48   : > { %p2894_p5 = pnand %p2893_p3, %p2889_p10 }
  0x4a   : > { %2897 = shalt.err (!%p2894_p5)
}
  0x4b   : > { %2563 = dma.hbm_to_vmem [thread:$0]  (!%p3134_p2), %s3160_s26, 1024, %s321_s14, %s3141_s16, %s4068_s10, %s4068_s10, %s4067_s23  }
  0x4c   : > { %332 = sbr.rel (%p3087_p9) target bundleno = 1228 (0x4cc), region = 48  ;;  %p4070_p11 = scmp.eq.s32.totalorder (!%p3087_p9), %s3064_s28, 0 }
  0x51   : > { %2958 = dma.done.wait (%p4070_p11), [#allocation4], 2048   ;;  %p4071_p12 = pmov %p4070_p11 }
  0x52   : > { %s339_s15 = sand.u32 1, %s3064_s28   ;;  %s3212_s18 = sand.u32 1, %s2983_s25  }
  0x53   : > { %2960 = vsyncadd (%p4071_p12), [#allocation4], 4294965248  ;;  %s2187_s8 = sshll.u32 %s3212_s18, 6  ;;  %s340_s11 = scalar_lea.sflag [#allocation7], %s339_s15 }
  0x54   : > { %s3215_s19 = scalar_lea.vmem [#allocation6], %s2187_s8 }
  0x55   : > { %2962 = dma.done.wait (%p3073_p4), %s340_s11, 2048  }
  0x56   : > { %2964 = vsyncadd (%p3073_p4), %s340_s11, 4294965248  ;;  %s3221_s26 = scalar_lea.vmem [#allocation8], %s2187_s8  ;;  %p4072_p9 = pmov %p4070_p11 }
  0x58   : > { %2966 = dma.done.wait (%p4072_p9), [#allocation10], 4096   ;;  %p4073_p2 = pmov %p4072_p9 }
  0x5a   : > { %2968 = vsyncadd (%p4073_p2), [#allocation10], 4294963200  ;;  %p4074_p1 = pmov %p4073_p2 }
  0x5c   : > { %2970 = dma.done.wait (%p4074_p1), [#allocation13], 1024   ;;  %p4075_p8 = pmov %p4074_p1 }
  0x5d   : > { %s2192_s12 = sshll.u32 %s3212_s18, 7  ;;  %p4076_p4 = scmp.ne.s32.totalorder %s3064_s28, 0 }
  0x5e   : > { %2972 = vsyncadd (%p4075_p8), [#allocation13], 4294966272  ;;  %s3232_s16 = scalar_lea.vmem [#allocation14], %s2192_s12 }
  0x5f   : > { %408 = sbr.rel (%p4076_p4) target bundleno = 117 (0x75), region = 76 }
  0x64   : > { %v409_v0 = vld [vmem:[#allocation3] sm:$0xff]  ;;  %v410_v1 = vld [vmem:[#allocation3 + $0x8] sm:$0xff]  ;;  %v411_v2 = vld [vmem:[#allocation3 + $0x10] sm:$0xff] }
  0x65   : > { %425 = vst [vmem:[#allocation2 + $0x30] sm:$0xff] %v409_v0  ;;  %v412_v3 = vld [vmem:[#allocation3 + $0x18] sm:$0xff]  ;;  %v413_v4 = vld [vmem:[#allocation3 + $0x20] sm:$0xff]  ;;  %v414_v5 = vld [vmem:[#allocation3 + $0x28] sm:$0xff] }
  0x66   : > { %426 = vst [vmem:[#allocation2] sm:$0xff] %v410_v1  ;;  %v415_v6 = vld [vmem:[#allocation3 + $0x30] sm:$0xff]  ;;  %v416_v7 = vld [vmem:[#allocation3 + $0x38] sm:$0xff]  ;;  %v417_v8 = vld [vmem:[#allocation3 + $0x40] sm:$0xff] }
  0x67   : > { %427 = vst [vmem:[#allocation2 + $0x58] sm:$0xff] %v411_v2  ;;  %v418_v9 = vld [vmem:[#allocation3 + $0x48] sm:$0xff]  ;;  %v419_v10 = vld [vmem:[#allocation3 + $0x50] sm:$0xff]  ;;  %v420_v11 = vld [vmem:[#allocation3 + $0x58] sm:$0xff] }
  0x68   : > { %428 = vst [vmem:[#allocation2 + $0x18] sm:$0xff] %v412_v3  ;;  %v421_v12 = vld [vmem:[#allocation3 + $0x60] sm:$0xff]  ;;  %v422_v13 = vld [vmem:[#allocation3 + $0x68] sm:$0xff]  ;;  %v423_v14 = vld [vmem:[#allocation3 + $0x70] sm:$0xff] }
  0x69   : > { %429 = vst [vmem:[#allocation2 + $0x50] sm:$0xff] %v413_v4  ;;  %v424_v15 = vld [vmem:[#allocation3 + $0x78] sm:$0xff] }
  0x6a   : > { %430 = vst [vmem:[#allocation2 + $0x68] sm:$0xff] %v414_v5 }
  0x6b   : > { %431 = vst [vmem:[#allocation2 + $0x8] sm:$0xff] %v415_v6 }
  0x6c   : > { %432 = vst [vmem:[#allocation2 + $0x48] sm:$0xff] %v416_v7 }
  0x6d   : > { %433 = vst [vmem:[#allocation2 + $0x40] sm:$0xff] %v417_v8 }
  0x6e   : > { %434 = vst [vmem:[#allocation2 + $0x20] sm:$0xff] %v418_v9 }
  0x6f   : > { %435 = vst [vmem:[#allocation2 + $0x10] sm:$0xff] %v419_v10 }
  0x70   : > { %436 = vst [vmem:[#allocation2 + $0x38] sm:$0xff] %v420_v11 }
  0x71   : > { %437 = vst [vmem:[#allocation2 + $0x60] sm:$0xff] %v421_v12 }
  0x72   : > { %438 = vst [vmem:[#allocation2 + $0x70] sm:$0xff] %v422_v13 }
  0x73   : > { %439 = vst [vmem:[#allocation2 + $0x78] sm:$0xff] %v423_v14 }
  0x74   : > { %440 = vst [vmem:[#allocation2 + $0x28] sm:$0xff] %v424_v15 }
  0x75 PF: > { %v2464_v16 = vld [vmem:[#allocation9 + $0x38] sm:$0xff]  ;;  %v2463_v17 = vld [vmem:[#allocation9 + $0x30] sm:$0xff]  ;;  %v2462_v18 = vld [vmem:[#allocation9 + $0x28] sm:$0xff]  ;;  %s2497_s10 = sshll.u32 %s3064_s28, 7  ;;  %s2035_s3 = sshll.u32 %s3232_s16, 4  ;;  %s2036_s3 = int_to_ptr.vmem [resolvable:$true] %s2035_s3 }
  0x76   : > { %2498 = vmatpush.bf16.msra.mxu3 %v2464_v16  ;;  %561 = vmatpush.bf16.msra.mxu0 %v2464_v16  ;;  %v2461_v19 = vld [vmem:[#allocation9 + $0x20] sm:$0xff]  ;;  %v2460_v20 = vld [vmem:[#allocation9 + $0x18] sm:$0xff]  ;;  %v2459_v21 = vld [vmem:[#allocation9 + $0x10] sm:$0xff]  ;;  %s2034_s13 = scalar_lea.hbm %s4042_s7, %s2497_s10  ;;  %s2023_s28 = scalar_lea.sflag [#allocation5], %s3212_s18 }
  0x77   : > { %v2458_v22 = vld [vmem:[#allocation9 + $0x8] sm:$0xff]  ;;  %v2457_v23 = vld [vmem:[#allocation9] sm:$0xff]  ;;  %v445_v24 = vld [vmem:[#allocation2 + $0x50] sm:$0xff]  ;;  %s2037_s21 = sshll.u32 %s2034_s13, 4  ;;  %s2933_s29 = scalar_lea.hbm %s4042_s7, 384  ;;  %s2038_s21 = int_to_ptr.hbm [resolvable:$true] %s2037_s21 }
  0x78   : > { %v446_v25 = vld [vmem:[#allocation2 + $0x68] sm:$0xff]  ;;  %v449_v30 = vld [vmem:[#allocation2 + $0x40] sm:$0xff]  ;;  %v451_v33 = vld [vmem:[#allocation2 + $0x10] sm:$0xff]  ;;  %s2927_s0 = sshra.s32 %s2038_s21, 4  ;;  %s2928_s0 = int_to_ptr.hbm [resolvable:$true] %s2927_s0 }
  0x79   : > { %v3236_v26 = vpack.c.bf16 %v446_v25, %v445_v24  ;;  %v447_v27 = vld [vmem:[#allocation2 + $0x8] sm:$0xff]  ;;  %v450_v31 = vld [vmem:[#allocation2 + $0x20] sm:$0xff]  ;;  %v452_v34 = vld [vmem:[#allocation2 + $0x38] sm:$0xff]  ;;  %s2929_s17 = scalar_lea.hbm %s2928_s0, 128  ;;  %p2934_p3 = scmp.lt.s32.totalorder %s2928_s0, %s4042_s7 }
  0x7a   : > { %2499 = vmatpush.bf16.msra.mxu3 %v2463_v17  ;;  %562 = vmatpush.bf16.msra.mxu0 %v2463_v17  ;;  %v448_v28 = vld [vmem:[#allocation2 + $0x48] sm:$0xff]  ;;  %v3242_v32 = vpack.c.bf16 %v450_v31, %v449_v30  ;;  %v3245_v35 = vpack.c.bf16 %v452_v34, %v451_v33  ;;  %v441_v36 = vld [vmem:[#allocation2 + $0x30] sm:$0xff]  ;;  %v442_v37 = vld [vmem:[#allocation2] sm:$0xff]  ;;  %p2930_p10 = scmp.ne.s32.totalorder %s2928_s0, %s2929_s17  ;;  %p2935_p5 = scmp.lt.s32.totalorder %s2933_s29, %s2929_s17 }
  0x7b   : > { %v3239_v29 = vpack.c.bf16 %v448_v28, %v447_v27  ;;  %v3248_v38 = vpack.c.bf16 %v442_v37, %v441_v36  ;;  %v453_v39 = vld [vmem:[#allocation2 + $0x60] sm:$0xff]  ;;  %v454_v40 = vld [vmem:[#allocation2 + $0x70] sm:$0xff]  ;;  %v443_v42 = vld [vmem:[#allocation2 + $0x58] sm:$0xff] }
  0x7c   : > { %v3251_v41 = vpack.c.bf16 %v454_v40, %v453_v39  ;;  %v444_v43 = vld [vmem:[#allocation2 + $0x18] sm:$0xff]  ;;  %v456_v46 = vld [vmem:[#allocation2 + $0x28] sm:$0xff]  ;;  %v2471_v52 = vld [vmem:[#allocation11 + $0x30] sm:$0xff]  ;;  %p2931_p13 = pnand %p2930_p10, %p3119_p7  ;;  %p2936_p11 = por %p2935_p5, %p2934_p3 }
  0x7d   : > { %v3253_v44 = vpack.c.bf16 %v444_v43, %v443_v42  ;;  %v455_v45 = vld [vmem:[#allocation2 + $0x78] sm:$0xff]  ;;  %v2470_v54 = vld [vmem:[#allocation11 + $0x28] sm:$0xff]  ;;  %v2469_v55 = vld [vmem:[#allocation11 + $0x20] sm:$0xff] }
  0x7e   : > { %2500 = vmatpush.bf16.msra.mxu3 %v2462_v18  ;;  %563 = vmatpush.bf16.msra.mxu0 %v2462_v18  ;;  %v3257_v47 = vpack.c.bf16 %v456_v46, %v455_v45  ;;  %v2472_v51 = vld [vmem:[#allocation11 + $0x38] sm:$0xff]  ;;  %v2467_v58 = vld [vmem:[#allocation11 + $0x10] sm:$0xff]  ;;  %v2466_v60 = vld [vmem:[#allocation11 + $0x8] sm:$0xff]  ;;  %p2932_p0 = pneg %p2931_p13 }
  0x7f   : > { %2506 = vmatpush.bf16.msra.mxu1 %v2472_v51  ;;  %v2468_v57 = vld [vmem:[#allocation11 + $0x18] sm:$0xff]  ;;  %v2465_v61 = vld [vmem:[#allocation11] sm:$0xff]  ;;  %v3265_v1 = vld [vmem:[%s3221_s26 + $0x8] sm:$0xff] }
  0x80   : > { %v3261_v63 = vld [vmem:[%s3221_s26] sm:$0xff]  ;;  %v3269_v14 = vld [vmem:[%s3221_s26 + $0x10] sm:$0xff]  ;;  %v3300_v27 = vld [vmem:[%s3221_s26 + $0x28] sm:$0xff]  ;;  %p2937_p12 = pnand %p2936_p11, %p2932_p0 }
  0x81   : > { %v3291_v24 = vld [vmem:[%s3221_s26 + $0x20] sm:$0xff]  ;;  %v3305_v28 = vld [vmem:[%s3215_s19 + $0x28] sm:$0xff]  ;;  %v3308_v30 = vld [vmem:[%s3221_s26 + $0x30] sm:$0xff] }
  0x82   : > { %2501 = vmatpush.bf16.msra.mxu3 %v2461_v19  ;;  %564 = vmatpush.bf16.msra.mxu0 %v2461_v19  ;;  %v3273_v19 = vld [vmem:[%s3215_s19] sm:$0xff]  ;;  %v2480_v31 = vld [vmem:[#allocation9 + $0x78] sm:$0xff]  ;;  %v2479_v33 = vld [vmem:[#allocation9 + $0x70] sm:$0xff] }
  0x83   : > { %2507 = vmatpush.bf16.msra.mxu1 %v2471_v52  ;;  %v3297_v25 = vld [vmem:[%s3215_s19 + $0x20] sm:$0xff]  ;;  %v2478_v34 = vld [vmem:[#allocation9 + $0x68] sm:$0xff]  ;;  %v3313_v37 = vld [vmem:[%s3215_s19 + $0x30] sm:$0xff] }
  0x84   : > { %v2477_v36 = vld [vmem:[#allocation9 + $0x60] sm:$0xff]  ;;  %v3316_v39 = vld [vmem:[%s3221_s26 + $0x38] sm:$0xff]  ;;  %v2475_v45 = vld [vmem:[#allocation9 + $0x50] sm:$0xff] }
  0x85   : > { %v3321_v40 = vld [vmem:[%s3215_s19 + $0x38] sm:$0xff] }
  0x86   : > { %2502 = vmatpush.bf16.msra.mxu3 %v2460_v20  ;;  %565 = vmatpush.bf16.msra.mxu0 %v2460_v20  ;;  %v3276_v20 = vld [vmem:[%s3215_s19 + $0x10] sm:$0xff]  ;;  %v2476_v43 = vld [vmem:[#allocation9 + $0x58] sm:$0xff] }
  0x87   : > { %2508 = vmatpush.bf16.msra.mxu1 %v2470_v54 }
  0x8a   : > { %2503 = vmatpush.bf16.msra.mxu3 %v2459_v21  ;;  %566 = vmatpush.bf16.msra.mxu0 %v2459_v21  ;;  %v3279_v21 = vld [vmem:[%s3221_s26 + $0x18] sm:$0xff] }
  0x8b   : > { %2509 = vmatpush.bf16.msra.mxu1 %v2469_v55 }
  0x8e   : > { %2504 = vmatpush.bf16.msra.mxu3 %v2458_v22  ;;  %567 = vmatpush.bf16.msra.mxu0 %v2458_v22  ;;  %v3285_v22 = vld [vmem:[%s3215_s19 + $0x8] sm:$0xff] }
  0x8f   : > { %2510 = vmatpush.bf16.msra.mxu1 %v2468_v57 }
  0x92   : > { %2505 = vmatpush.bf16.msra.mxu3 %v2457_v23  ;;  %568 = vmatpush.bf16.msra.mxu0 %v2457_v23  ;;  %v3288_v23 = vld [vmem:[%s3215_s19 + $0x18] sm:$0xff] }
  0x93   : > { %2511 = vmatpush.bf16.msra.mxu1 %v2467_v58 }
  0x95   : > { %579 = vmatmul.bf16.vlgmr.msra.gmra.mxu3 %v3236_v26  ;;  %569 = vmatmul.bf16.vlgmr.msra.gmra.mxu0 %v3248_v38 }
  0x96   : > { %730 = vmatpush.bf16.msrb.mxu0 %v2472_v51  ;;  %997 = vmatpush.bf16.msrb.mxu3 %v2480_v31 }
  0x97   : > { %2512 = vmatpush.bf16.msra.mxu1 %v2466_v60 }
  0x9a   : > { %731 = vmatpush.bf16.msrb.mxu0 %v2471_v52  ;;  %998 = vmatpush.bf16.msrb.mxu3 %v2479_v33 }
  0x9b   : > { %2513 = vmatpush.bf16.msra.mxu1 %v2465_v61 }
  0x9e   : > { %732 = vmatpush.bf16.msrb.mxu0 %v2470_v54  ;;  %748 = vmatmul.bf16.vlgmr.msra.gmra.mxu1 %v3269_v14 }
  0x9f   : > { %999 = vmatpush.bf16.msrb.mxu3 %v2478_v34 }
  0xa2   : > { %733 = vmatpush.bf16.msrb.mxu0 %v2469_v55 }
  0xa3   : > { %1000 = vmatpush.bf16.msrb.mxu3 %v2477_v36 }
  0xa5   : > { %584 = vmatmul.bf16.gmra.mxu3 %v3239_v29  ;;  %574 = vmatmul.bf16.gmra.mxu0 %v3253_v44 }
  0xa6   : > { %734 = vmatpush.bf16.msrb.mxu0 %v2468_v57 }
  0xa7   : > { %1001 = vmatpush.bf16.msrb.mxu3 %v2476_v43 }
  0xaa   : > { %735 = vmatpush.bf16.msrb.mxu0 %v2467_v58 }
  0xab   : > { %1002 = vmatpush.bf16.msrb.mxu3 %v2475_v45 }
  0xae   : > { %736 = vmatpush.bf16.msrb.mxu0 %v2466_v60  ;;  %753 = vmatmul.bf16.gmra.mxu1 %v3279_v21 }
  0xb2   : > { %737 = vmatpush.bf16.msrb.mxu0 %v2465_v61 }
  0xb5   : > { %589 = vmatmul.bf16.gmra.mxu3 %v3242_v32  ;;  %738 = vmatmul.bf16.vlgmr.msrb.gmra.mxu0 %v3261_v63 }
  0xbe   : > { %758 = vmatmul.bf16.gmra.mxu1 %v3291_v24 }
  0xc5   : > { %594 = vmatmul.bf16.gmra.mxu3 %v3245_v35  ;;  %743 = vmatmul.bf16.gmra.mxu0 %v3265_v1 }
  0xce   : > { %763 = vmatmul.bf16.gmra.mxu1 %v3300_v27 }
  0xd5   : > { %599 = vmatmul.bf16.gmra.mxu3 %v3251_v41 }
  0xde   : > { %768 = vmatmul.bf16.gmra.mxu1 %v3308_v30 }
  0xe5   : > { %604 = vmatmul.bf16.gmra.mxu3 %v3257_v47 }
  0xee   : > { %773 = vmatmul.bf16.gmra.mxu1 %v3316_v39 }
 0x112   : > { %v570_v4 = vpop.f32.mrf.mxu0 }
 0x118   : > { %v580_v48 = vpop.f32.mrf.mxu3 }
 0x11a   : > { %v572_v8 = vpop.f32.mrf.mxu0 }
 0x11b   : > { %v610_v18 = vpack.c.bf16 %v572_v8, %v570_v4 }
 0x120   : > { %v582_v49 = vpop.f32.mrf.mxu3 }
 0x121   : > { %v612_v15 = vpack.c.bf16 %v582_v49, %v580_v48  ;;  %v2474_v48 = vld [vmem:[#allocation9 + $0x48] sm:$0xff]  ;;  %v2473_v49 = vld [vmem:[#allocation9 + $0x40] sm:$0xff] }
 0x122   : > { %v575_v11 = vpop.f32.mrf.mxu0  ;;  %1003 = vmatpush.bf16.msrb.mxu3 %v2474_v48 }
 0x126   : > { %1004 = vmatpush.bf16.msrb.mxu3 %v2473_v49 }
 0x128   : > { %v585_v50 = vpop.f32.mrf.mxu3 }
 0x12a   : > { %v577_v16 = vpop.f32.mrf.mxu0 }
 0x12b   : > { %v611_v17 = vpack.c.bf16 %v577_v16, %v575_v11 }
 0x130   : > { %v587_v53 = vpop.f32.mrf.mxu3 }
 0x131   : > { %v613_v13 = vpack.c.bf16 %v587_v53, %v585_v50  ;;  %v749_v53 = vpop.f32.mrf.mxu1 }
 0x132   : > { %v739_v42 = vpop.f32.mrf.mxu0 }
 0x138   : > { %v590_v56 = vpop.f32.mrf.mxu3 }
 0x139   : > { %v751_v60 = vpop.f32.mrf.mxu1 }
 0x13a   : > { %v741_v46 = vpop.f32.mrf.mxu0 }
 0x140   : > { %v592_v59 = vpop.f32.mrf.mxu3 }
 0x141   : > { %v614_v12 = vpack.c.bf16 %v592_v59, %v590_v56 }
 0x142   : > { %v744_v50 = vpop.f32.mrf.mxu0 }
 0x148   : > { %v595_v62 = vpop.f32.mrf.mxu3 }
 0x14a   : > { %v746_v51 = vpop.f32.mrf.mxu0 }
 0x150   : > { %v597_v0 = vpop.f32.mrf.mxu3 }
 0x151   : > { %v615_v10 = vpack.c.bf16 %v597_v0, %v595_v62 }
 0x158   : > { %v600_v2 = vpop.f32.mrf.mxu3 }
 0x160   : > { %v602_v3 = vpop.f32.mrf.mxu3 }
 0x161   : > { %v616_v9 = vpack.c.bf16 %v602_v3, %v600_v2 }
 0x168   : > { %v605_v5 = vpop.f32.mrf.mxu3 }
 0x170   : > { %v607_v6 = vpop.f32.mrf.mxu3 }
 0x171   : > { %v617_v7 = vpack.c.bf16 %v607_v6, %v605_v5  ;;  %v754_v5 = vpop.f32.mrf.mxu1 }
 0x173   : > { %827 = vmatpush.bf16.msra.mxu0 %v617_v7  ;;  %2514 = vmatpush.bf16.msra.mxu2 %v617_v7 }
 0x177   : > { %828 = vmatpush.bf16.msra.mxu0 %v616_v9  ;;  %2515 = vmatpush.bf16.msra.mxu2 %v616_v9 }
 0x17b   : > { %829 = vmatpush.bf16.msra.mxu0 %v615_v10  ;;  %2516 = vmatpush.bf16.msra.mxu2 %v615_v10 }
 0x17f   : > { %830 = vmatpush.bf16.msra.mxu0 %v614_v12  ;;  %2517 = vmatpush.bf16.msra.mxu2 %v614_v12 }
 0x183   : > { %831 = vmatpush.bf16.msra.mxu0 %v613_v13  ;;  %2518 = vmatpush.bf16.msra.mxu2 %v613_v13 }
 0x187   : > { %832 = vmatpush.bf16.msra.mxu0 %v612_v15  ;;  %2519 = vmatpush.bf16.msra.mxu2 %v612_v15  ;;  %v756_v15 = vpop.f32.mrf.mxu1 }
 0x18b   : > { %833 = vmatpush.bf16.msra.mxu0 %v611_v17  ;;  %2520 = vmatpush.bf16.msra.mxu2 %v611_v17 }
 0x18f   : > { %834 = vmatpush.bf16.msra.mxu0 %v610_v18  ;;  %2521 = vmatpush.bf16.msra.mxu2 %v610_v18  ;;  %v759_v34 = vpop.f32.mrf.mxu1 }
 0x192   : > { %835 = vmatmul.bf16.vlgmr.msra.gmra.mxu0 %v3273_v19  ;;  %845 = vmatmul.bf16.vlgmr.msra.gmra.mxu2 %v3276_v20 }
 0x197   : > { %v761_v49 = vpop.f32.mrf.mxu1 }
 0x1a2   : > { %840 = vmatmul.bf16.gmra.mxu0 %v3285_v22  ;;  %850 = vmatmul.bf16.gmra.mxu2 %v3288_v23 }
 0x1b2   : > { %855 = vmatmul.bf16.gmra.mxu2 %v3297_v25 }
 0x1c2   : > { %860 = vmatmul.bf16.gmra.mxu2 %v3305_v28 }
 0x1d2   : > { %865 = vmatmul.bf16.gmra.mxu2 %v3313_v37 }
 0x1e2   : > { %870 = vmatmul.bf16.gmra.mxu2 %v3321_v40 }
 0x20f   : > { %v836_v52 = vpop.f32.mrf.mxu0 }
 0x210   : > { %v837_v54 = vadd.f32 %v836_v52, %v739_v42 }
 0x212   : > { %v892_v57 = vmul.f32 0.22916667, %v837_v54  ;;  %vm876_vm0 = vcmp.ge.f32.partialorder %v837_v54, 0.0 }
 0x214   : > { %v908_v61 = vsel %vm876_vm0, %v837_v54, %v892_v57 }
 0x215   : > { %v846_v55 = vpop.f32.mrf.mxu2 }
 0x216   : > { %v847_v17 = vadd.f32 %v846_v55, %v749_v53 }
 0x217   : > { %v838_v56 = vpop.f32.mrf.mxu0 }
 0x218   : > { %v839_v58 = vadd.f32 %v838_v56, %v741_v46  ;;  %v896_v31 = vmul.f32 0.22916667, %v847_v17  ;;  %vm880_vm4 = vcmp.ge.f32.partialorder %v847_v17, 0.0  ;;  %v764_v56 = vpop.f32.mrf.mxu1 }
 0x21a   : > { %vm877_vm1 = vcmp.ge.f32.partialorder %v839_v58, 0.0  ;;  %v893_v59 = vmul.f32 0.22916667, %v839_v58  ;;  %v912_v42 = vsel %vm880_vm4, %v847_v17, %v896_v31 }
 0x21c   : > { %v909_v62 = vsel %vm877_vm1, %v839_v58, %v893_v59 }
 0x21d   : > { %v924_v0 = vpack.c.bf16 %v909_v62, %v908_v61  ;;  %v848_v2 = vpop.f32.mrf.mxu2 }
 0x21e   : > { %v849_v18 = vadd.f32 %v848_v2, %v751_v60 }
 0x21f   : > { %v841_v3 = vpop.f32.mrf.mxu0  ;;  %1005 = vmatmul.bf16.vlgmr.msrb.gmra.mxu3 %v924_v0 }
 0x220   : > { %v842_v4 = vadd.f32 %v841_v3, %v744_v50  ;;  %v897_v33 = vmul.f32 0.22916667, %v849_v18  ;;  %vm881_vm5 = vcmp.ge.f32.partialorder %v849_v18, 0.0  ;;  %v766_v62 = vpop.f32.mrf.mxu1 }
 0x222   : > { %v894_v8 = vmul.f32 0.22916667, %v842_v4  ;;  %vm878_vm2 = vcmp.ge.f32.partialorder %v842_v4, 0.0  ;;  %v913_v43 = vsel %vm881_vm5, %v849_v18, %v897_v33 }
 0x223   : > { %v926_v45 = vpack.c.bf16 %v913_v43, %v912_v42 }
 0x224   : > { %v910_v11 = vsel %vm878_vm2, %v842_v4, %v894_v8 }
 0x225   : > { %v851_v6 = vpop.f32.mrf.mxu2 }
 0x226   : > { %v852_v46 = vadd.f32 %v851_v6, %v754_v5 }
 0x227   : > { %v843_v7 = vpop.f32.mrf.mxu0 }
 0x228   : > { %v844_v9 = vadd.f32 %v843_v7, %v746_v51  ;;  %v898_v51 = vmul.f32 0.22916667, %v852_v46  ;;  %vm882_vm6 = vcmp.ge.f32.partialorder %v852_v46, 0.0  ;;  %v769_v5 = vpop.f32.mrf.mxu1 }
 0x22a   : > { %v895_v10 = vmul.f32 0.22916667, %v844_v9  ;;  %vm879_vm3 = vcmp.ge.f32.partialorder %v844_v9, 0.0  ;;  %v914_v53 = vsel %vm882_vm6, %v852_v46, %v898_v51 }
 0x22c   : > { %v911_v12 = vsel %vm879_vm3, %v844_v9, %v895_v10 }
 0x22d   : > { %v925_v13 = vpack.c.bf16 %v911_v12, %v910_v11  ;;  %v853_v16 = vpop.f32.mrf.mxu2 }
 0x22e   : > { %v854_v48 = vadd.f32 %v853_v16, %v756_v15 }
 0x22f   : > { %1010 = vmatmul.bf16.gmra.mxu3 %v925_v13 }
 0x230   : > { %v899_v52 = vmul.f32 0.22916667, %v854_v48  ;;  %vm883_vm7 = vcmp.ge.f32.partialorder %v854_v48, 0.0  ;;  %v771_v13 = vpop.f32.mrf.mxu1 }
 0x232   : > { %v915_v54 = vsel %vm883_vm7, %v854_v48, %v899_v52 }
 0x233   : > { %v927_v55 = vpack.c.bf16 %v915_v54, %v914_v53 }
 0x235   : > { %v856_v36 = vpop.f32.mrf.mxu2 }
 0x236   : > { %v857_v58 = vadd.f32 %v856_v36, %v759_v34 }
 0x238   : > { %v900_v60 = vmul.f32 0.22916667, %v857_v58  ;;  %vm884_vm8 = vcmp.ge.f32.partialorder %v857_v58, 0.0  ;;  %v774_v31 = vpop.f32.mrf.mxu1 }
 0x23a   : > { %v916_v2 = vsel %vm884_vm8, %v857_v58, %v900_v60 }
 0x23d   : > { %v858_v50 = vpop.f32.mrf.mxu2 }
 0x23e   : > { %v859_v59 = vadd.f32 %v858_v50, %v761_v49 }
 0x23f   : > { %1015 = vmatmul.bf16.gmra.mxu3 %v926_v45 }
 0x240   : > { %v901_v61 = vmul.f32 0.22916667, %v859_v59  ;;  %vm885_vm9 = vcmp.ge.f32.partialorder %v859_v59, 0.0  ;;  %v776_v46 = vpop.f32.mrf.mxu1 }
 0x242   : > { %v917_v3 = vsel %vm885_vm9, %v859_v59, %v901_v61 }
 0x243   : > { %v928_v4 = vpack.c.bf16 %v917_v3, %v916_v2 }
 0x245   : > { %v861_v57 = vpop.f32.mrf.mxu2 }
 0x246   : > { %v862_v7 = vadd.f32 %v861_v57, %v764_v56 }
 0x248   : > { %v902_v9 = vmul.f32 0.22916667, %v862_v7  ;;  %vm886_vm10 = vcmp.ge.f32.partialorder %v862_v7, 0.0 }
 0x24a   : > { %v918_v11 = vsel %vm886_vm10, %v862_v7, %v902_v9  ;;  %v2488_v9 = vld [vmem:[#allocation11 + $0x78] sm:$0xff] }
 0x24b   : > { %1119 = vmatpush.bf16.msrb.mxu0 %v2488_v9 }
 0x24d   : > { %v863_v0 = vpop.f32.mrf.mxu2 }
 0x24e   : > { %v864_v8 = vadd.f32 %v863_v0, %v766_v62 }
 0x24f   : > { %1020 = vmatmul.bf16.gmra.mxu3 %v927_v55 }
 0x250   : > { %v903_v10 = vmul.f32 0.22916667, %v864_v8  ;;  %vm887_vm11 = vcmp.ge.f32.partialorder %v864_v8, 0.0 }
 0x252   : > { %v919_v12 = vsel %vm887_vm11, %v864_v8, %v903_v10  ;;  %v2487_v10 = vld [vmem:[#allocation11 + $0x70] sm:$0xff] }
 0x253   : > { %v929_v16 = vpack.c.bf16 %v919_v12, %v918_v11  ;;  %1120 = vmatpush.bf16.msrb.mxu0 %v2487_v10  ;;  %v2486_v12 = vld [vmem:[#allocation11 + $0x68] sm:$0xff] }
 0x255   : > { %v866_v6 = vpop.f32.mrf.mxu2 }
 0x256   : > { %v867_v17 = vadd.f32 %v866_v6, %v769_v5 }
 0x257   : > { %1121 = vmatpush.bf16.msrb.mxu0 %v2486_v12 }
 0x258   : > { %v904_v34 = vmul.f32 0.22916667, %v867_v17  ;;  %vm888_vm12 = vcmp.ge.f32.partialorder %v867_v17, 0.0 }
 0x25a   : > { %v920_v42 = vsel %vm888_vm12, %v867_v17, %v904_v34  ;;  %v2483_v17 = vld [vmem:[#allocation11 + $0x50] sm:$0xff] }
 0x25d   : > { %v868_v15 = vpop.f32.mrf.mxu2 }
 0x25e   : > { %v869_v18 = vadd.f32 %v868_v15, %v771_v13  ;;  %v2485_v13 = vld [vmem:[#allocation11 + $0x60] sm:$0xff] }
 0x25f   : > { %1025 = vmatmul.bf16.gmra.mxu3 %v928_v4  ;;  %1122 = vmatpush.bf16.msrb.mxu0 %v2485_v13 }
 0x260   : > { %v905_v36 = vmul.f32 0.22916667, %v869_v18  ;;  %vm889_vm13 = vcmp.ge.f32.partialorder %v869_v18, 0.0 }
 0x262   : > { %v921_v43 = vsel %vm889_vm13, %v869_v18, %v905_v36 }
 0x263   : > { %v930_v45 = vpack.c.bf16 %v921_v43, %v920_v42 }
 0x265   : > { %v871_v33 = vpop.f32.mrf.mxu2 }
 0x266   : > { %v872_v49 = vadd.f32 %v871_v33, %v774_v31  ;;  %v2482_v31 = vld [vmem:[#allocation11 + $0x48] sm:$0xff]  ;;  %v2481_v33 = vld [vmem:[#allocation11 + $0x40] sm:$0xff] }
 0x268   : > { %v906_v51 = vmul.f32 0.22916667, %v872_v49  ;;  %vm890_vm14 = vcmp.ge.f32.partialorder %v872_v49, 0.0 }
 0x26a   : > { %v922_v53 = vsel %vm890_vm14, %v872_v49, %v906_v51  ;;  %v2493_v49 = vld [vmem:[#allocation12 + $0x20] sm:$0xff] }
 0x26d   : > { %v873_v48 = vpop.f32.mrf.mxu2 }
 0x26e   : > { %v874_v50 = vadd.f32 %v873_v48, %v776_v46  ;;  %v2494_v48 = vld [vmem:[#allocation12 + $0x28] sm:$0xff] }
 0x26f   : > { %1030 = vmatmul.bf16.gmra.mxu3 %v929_v16  ;;  %v2484_v16 = vld [vmem:[#allocation11 + $0x58] sm:$0xff] }
 0x270   : > { %v907_v52 = vmul.f32 0.22916667, %v874_v50  ;;  %vm891_vm15 = vcmp.ge.f32.partialorder %v874_v50, 0.0  ;;  %1123 = vmatpush.bf16.msrb.mxu0 %v2484_v16 }
 0x272   : > { %v923_v54 = vsel %vm891_vm15, %v874_v50, %v907_v52 }
 0x273   : > { %v931_v55 = vpack.c.bf16 %v923_v54, %v922_v53 }
 0x274   : > { %1124 = vmatpush.bf16.msrb.mxu0 %v2483_v17 }
 0x278   : > { %1125 = vmatpush.bf16.msrb.mxu0 %v2482_v31 }
 0x27c   : > { %1126 = vmatpush.bf16.msrb.mxu0 %v2481_v33 }
 0x27f   : > { %1035 = vmatmul.bf16.gmra.mxu3 %v930_v45  ;;  %1127 = vmatmul.bf16.vlgmr.msrb.gmra.mxu0 %v3261_v63  ;;  %v2496_v63 = vld [vmem:[#allocation12 + $0x38] sm:$0xff] }
 0x280   : > { %1573 = vmatpush.bf16.msrb.mxu2 %v2496_v63 }
 0x28f   : > { %1040 = vmatmul.bf16.gmra.mxu3 %v931_v55  ;;  %1132 = vmatmul.bf16.gmra.mxu0 %v3265_v1  ;;  %v2495_v1 = vld [vmem:[#allocation12 + $0x30] sm:$0xff] }
 0x290   : > { %1574 = vmatpush.bf16.msrb.mxu2 %v2495_v1 }
 0x294   : > { %1575 = vmatpush.bf16.msrb.mxu2 %v2494_v48 }
 0x298   : > { %1576 = vmatpush.bf16.msrb.mxu2 %v2493_v49 }
 0x29f   : > { %1137 = vmatmul.bf16.gmra.mxu0 %v3269_v14  ;;  %v2492_v14 = vld [vmem:[#allocation12 + $0x18] sm:$0xff] }
 0x2a0   : > { %1577 = vmatpush.bf16.msrb.mxu2 %v2492_v14 }
 0x2a2   : > { %v1006_v56 = vpop.f32.mrf.mxu3 }
 0x2aa   : > { %v1008_v57 = vpop.f32.mrf.mxu3 }
 0x2ab   : > { %v1046_v58 = vpack.c.bf16 %v1008_v57, %v1006_v56 }
 0x2af   : > { %1142 = vmatmul.bf16.gmra.mxu0 %v3279_v21  ;;  %v2490_v21 = vld [vmem:[#allocation12 + $0x8] sm:$0xff] }
 0x2b2   : > { %v1011_v59 = vpop.f32.mrf.mxu3 }
 0x2ba   : > { %v1013_v60 = vpop.f32.mrf.mxu3 }
 0x2bb   : > { %v1047_v61 = vpack.c.bf16 %v1013_v60, %v1011_v59 }
 0x2bf   : > { %1147 = vmatmul.bf16.gmra.mxu0 %v3291_v24 }
 0x2c2   : > { %v1016_v62 = vpop.f32.mrf.mxu3 }
 0x2ca   : > { %v1018_v0 = vpop.f32.mrf.mxu3 }
 0x2cb   : > { %v1048_v2 = vpack.c.bf16 %v1018_v0, %v1016_v62 }
 0x2cf   : > { %1152 = vmatmul.bf16.gmra.mxu0 %v3300_v27 }
 0x2d2   : > { %v1021_v3 = vpop.f32.mrf.mxu3 }
 0x2da   : > { %v1023_v4 = vpop.f32.mrf.mxu3 }
 0x2db   : > { %v1049_v5 = vpack.c.bf16 %v1023_v4, %v1021_v3 }
 0x2df   : > { %1157 = vmatmul.bf16.gmra.mxu0 %v3308_v30 }
 0x2e2   : > { %v1026_v6 = vpop.f32.mrf.mxu3 }
 0x2ea   : > { %v1028_v7 = vpop.f32.mrf.mxu3 }
 0x2eb   : > { %v1050_v46 = vpack.c.bf16 %v1028_v7, %v1026_v6 }
 0x2ef   : > { %1162 = vmatmul.bf16.gmra.mxu0 %v3316_v39 }
 0x2f2   : > { %v1031_v8 = vpop.f32.mrf.mxu3 }
 0x2fa   : > { %v1033_v11 = vpop.f32.mrf.mxu3 }
 0x2fb   : > { %v1051_v45 = vpack.c.bf16 %v1033_v11, %v1031_v8 }
 0x302   : > { %v1036_v15 = vpop.f32.mrf.mxu3 }
 0x30a   : > { %v1038_v18 = vpop.f32.mrf.mxu3 }
 0x30b   : > { %v1052_v43 = vpack.c.bf16 %v1038_v18, %v1036_v15 }
 0x312   : > { %v1041_v34 = vpop.f32.mrf.mxu3 }
 0x31a   : > { %v1043_v36 = vpop.f32.mrf.mxu3 }
 0x31b   : > { %v1053_v42 = vpack.c.bf16 %v1043_v36, %v1041_v34 }
 0x31d   : > { %1168 = vmatpush.bf16.msrb.mxu1 %v1053_v42 }
 0x321   : > { %1169 = vmatpush.bf16.msrb.mxu1 %v1052_v43 }
 0x325   : > { %1170 = vmatpush.bf16.msrb.mxu1 %v1051_v45 }
 0x329   : > { %1171 = vmatpush.bf16.msrb.mxu1 %v1050_v46 }
 0x32d   : > { %1172 = vmatpush.bf16.msrb.mxu1 %v1049_v5 }
 0x331   : > { %1173 = vmatpush.bf16.msrb.mxu1 %v1048_v2 }
 0x335   : > { %1174 = vmatpush.bf16.msrb.mxu1 %v1047_v61 }
 0x339   : > { %1175 = vmatpush.bf16.msrb.mxu1 %v1046_v58 }
 0x33c   : > { %1176 = vmatmul.bf16.vlgmr.msrb.gmra.mxu1 %v3273_v19  ;;  %v2491_v19 = vld [vmem:[#allocation12 + $0x10] sm:$0xff] }
 0x33d   : > { %1578 = vmatpush.bf16.msrb.mxu2 %v2491_v19 }
 0x341   : > { %1579 = vmatpush.bf16.msrb.mxu2 %v2490_v21 }
 0x34c   : > { %1181 = vmatmul.bf16.gmra.mxu1 %v3285_v22  ;;  %v2489_v22 = vld [vmem:[#allocation12] sm:$0xff] }
 0x34d   : > { %1580 = vmatpush.bf16.msrb.mxu2 %v2489_v22 }
 0x350   : > { %1581 = vmatmul.bf16.vlgmr.msrb.gmra.mxu2 %v3248_v38 }
 0x35c   : > { %1186 = vmatmul.bf16.gmra.mxu1 %v3276_v20  ;;  %v1128_v20 = vpop.f32.mrf.mxu0 }
 0x360   : > { %1586 = vmatmul.bf16.gmra.mxu2 %v3253_v44 }
 0x36c   : > { %1191 = vmatmul.bf16.gmra.mxu1 %v3288_v23  ;;  %v1130_v23 = vpop.f32.mrf.mxu0 }
 0x370   : > { %1591 = vmatmul.bf16.gmra.mxu2 %v3236_v26 }
 0x374   : > { %v1133_v38 = vpop.f32.mrf.mxu0 }
 0x37c   : > { %1196 = vmatmul.bf16.gmra.mxu1 %v3297_v25  ;;  %v1135_v25 = vpop.f32.mrf.mxu0 }
 0x380   : > { %1596 = vmatmul.bf16.gmra.mxu2 %v3239_v29 }
 0x384   : > { %v1138_v29 = vpop.f32.mrf.mxu0 }
 0x38c   : > { %1201 = vmatmul.bf16.gmra.mxu1 %v3305_v28  ;;  %v1140_v53 = vpop.f32.mrf.mxu0 }
 0x390   : > { %1601 = vmatmul.bf16.gmra.mxu2 %v3242_v32 }
 0x394   : > { %v1143_v60 = vpop.f32.mrf.mxu0 }
 0x39c   : > { %1206 = vmatmul.bf16.gmra.mxu1 %v3313_v37 }
 0x3a0   : > { %1606 = vmatmul.bf16.gmra.mxu2 %v3245_v35 }
 0x3ac   : > { %1211 = vmatmul.bf16.gmra.mxu1 %v3321_v40 }
 0x3b0   : > { %1611 = vmatmul.bf16.gmra.mxu2 %v3251_v41  ;;  %v1145_v41 = vpop.f32.mrf.mxu0 }
 0x3b8   : > { %v1148_v11 = vpop.f32.mrf.mxu0 }
 0x3b9   : > { %v1177_v24 = vpop.f32.mrf.mxu1 }
 0x3ba   : > { %v1178_v44 = vadd.f32 %v1177_v24, %v1128_v20 }
 0x3bc   : > { %v1233_v27 = vmul.f32 0.22916667, %v1178_v44  ;;  %vm1217_vm0 = vcmp.ge.f32.partialorder %v1178_v44, 0.0 }
 0x3be   : > { %v3345_v30 = vsel %vm1217_vm0, %v1178_v44, %v1233_v27 }
 0x3bf   : > { %v1265_v26 = vmul.f32 %v3345_v30, %v3345_v30 }
 0x3c0   : > { %1616 = vmatmul.bf16.gmra.mxu2 %v3257_v47  ;;  %v1150_v18 = vpop.f32.mrf.mxu0 }
 0x3c1   : > { %v1179_v28 = vpop.f32.mrf.mxu1  ;;  %1281 = vadd.xlane.f32.xlu0 %v1265_v26 }
 0x3c2   : > { %v1180_v37 = vadd.f32 %v1179_v28, %v1130_v23 }
 0x3c4   : > { %v1234_v39 = vmul.f32 0.22916667, %v1180_v37  ;;  %vm1218_vm1 = vcmp.ge.f32.partialorder %v1180_v37, 0.0 }
 0x3c6   : > { %v3350_v40 = vsel %vm1218_vm1, %v1180_v37, %v1234_v39 }
 0x3c7   : > { %v1266_v32 = vmul.f32 %v3350_v40, %v3350_v40 }
 0x3c8   : > { %v1153_v1 = vpop.f32.mrf.mxu0 }
 0x3c9   : > { %v1182_v50 = vpop.f32.mrf.mxu1  ;;  %1283 = vadd.xlane.f32.xlu0 %v1266_v32 }
 0x3ca   : > { %v1183_v51 = vadd.f32 %v1182_v50, %v1133_v38  ;;  %v3391_v38 = vld [vmem:[%s4041_s6] ss:$0 sm:$0xff] }
 0x3cc   : > { %v1235_v52 = vmul.f32 0.22916667, %v1183_v51  ;;  %vm1219_vm2 = vcmp.ge.f32.partialorder %v1183_v51, 0.0 }
 0x3ce   : > { %v3354_v54 = vsel %vm1219_vm2, %v1183_v51, %v1235_v52 }
 0x3cf   : > { %v1267_v55 = vmul.f32 %v3354_v54, %v3354_v54 }
 0x3d0   : > { %v1155_v23 = vpop.f32.mrf.mxu0 }
 0x3d1   : > { %v1184_v35 = vpop.f32.mrf.mxu1  ;;  %1285 = vadd.xlane.f32.xlu1 %v1267_v55 }
 0x3d2   : > { %v1185_v56 = vadd.f32 %v1184_v35, %v1135_v25 }
 0x3d3   : > { %v1582_v31 = vpop.f32.mrf.mxu2 }
 0x3d4   : > { %v1236_v57 = vmul.f32 0.22916667, %v1185_v56  ;;  %vm1220_vm3 = vcmp.ge.f32.partialorder %v1185_v56, 0.0  ;;  %v1583_v44 = vadd.f32 %v3391_v38, %v1582_v31 }
 0x3d6   : > { %v3359_v58 = vsel %vm1220_vm3, %v1185_v56, %v1236_v57 }
 0x3d7   : > { %v1268_v59 = vmul.f32 %v3359_v58, %v3359_v58 }
 0x3d8   : > { %v1158_v32 = vpop.f32.mrf.mxu0 }
 0x3d9   : > { %v1187_v61 = vpop.f32.mrf.mxu1  ;;  %1287 = vadd.xlane.f32.xlu1 %v1268_v59 }
 0x3da   : > { %v1188_v62 = vadd.f32 %v1187_v61, %v1138_v29  ;;  %v2418_v29 = vmul.f32 -1.442695, %v1583_v44 }
 0x3db   : > { %v1584_v45 = vpop.f32.mrf.mxu2 }
 0x3dc   : > { %v1237_v0 = vmul.f32 0.22916667, %v1188_v62  ;;  %vm1221_vm4 = vcmp.ge.f32.partialorder %v1188_v62, 0.0  ;;  %2621 = vpow2.f32 %v2418_v29  ;;  %v1585_v51 = vadd.f32 %v3391_v38, %v1584_v45 }
 0x3de   : > { %v3363_v2 = vsel %vm1221_vm4, %v1188_v62, %v1237_v0  ;;  %v2419_v35 = vmul.f32 -1.442695, %v1585_v51 }
 0x3df   : > { %v1269_v3 = vmul.f32 %v3363_v2, %v3363_v2 }
 0x3e0   : > { %v1160_v62 = vpop.f32.mrf.mxu0  ;;  %2623 = vpow2.f32 %v2419_v35 }
 0x3e1   : > { %v1189_v4 = vpop.f32.mrf.mxu1  ;;  %1289 = vadd.xlane.f32.xlu2 %v1269_v3 }
 0x3e2   : > { %v1190_v5 = vadd.f32 %v1189_v4, %v1140_v53  ;;  %v2622_v59 = vpop.eup %2621 }
 0x3e3   : > { %v1587_v21 = vpop.f32.mrf.mxu2  ;;  %v3406_v3 = vadd.f32 1.0, %v2622_v59 }
 0x3e4   : > { %v1238_v6 = vmul.f32 0.22916667, %v1190_v5  ;;  %vm1222_vm5 = vcmp.ge.f32.partialorder %v1190_v5, 0.0 }
 0x3e5   : > { %2625 = vrcp.f32 %v3406_v3  ;;  %vm1691_vm0 = vweird.f32 %v3406_v3  ;;  %v1695_v59 = vand.u32 2147483647, %v3406_v3 }
 0x3e6   : > { %v3368_v7 = vsel %vm1222_vm5, %v1190_v5, %v1238_v6 }
 0x3e7   : > { %v1270_v8 = vmul.f32 %v3368_v7, %v3368_v7  ;;  %vm1696_vm4 = vcmp.eq.f32.partialorder %v1695_v59, 8.507059e+37 }
 0x3e9   : > { %v1192_v9 = vpop.f32.mrf.mxu1  ;;  %1291 = vadd.xlane.f32.xlu2 %v1270_v8 }
 0x3ea   : > { %v1193_v10 = vadd.f32 %v1192_v9, %v1143_v60  ;;  %v1588_v60 = vadd.f32 %v3391_v38, %v1587_v21  ;;  %v2624_v9 = vpop.eup %2623 }
 0x3eb   : > { %v1589_v28 = vpop.f32.mrf.mxu2 }
 0x3ec   : > { %v1239_v12 = vmul.f32 0.22916667, %v1193_v10  ;;  %vm1223_vm6 = vcmp.ge.f32.partialorder %v1193_v10, 0.0  ;;  %v1590_v6 = vadd.f32 %v3391_v38, %v1589_v28 }
 0x3ee   : > { %v3372_v13 = vsel %vm1223_vm6, %v1193_v10, %v1239_v12  ;;  %v2421_v12 = vmul.f32 -1.442695, %v1590_v6 }
 0x3ef   : > { %v1271_v15 = vmul.f32 %v3372_v13, %v3372_v13 }
 0x3f1   : > { %v1194_v16 = vpop.f32.mrf.mxu1  ;;  %1293 = vadd.xlane.f32.xlu0 %v1271_v15 }
 0x3f2   : > { %v1195_v47 = vadd.f32 %v1194_v16, %v1145_v41  ;;  %v2420_v41 = vmul.f32 -1.442695, %v1588_v60  ;;  %v3414_v16 = vadd.f32 1.0, %v2624_v9  ;;  %v2717_v60 = vld [vmem:[#allocation2 + $0x30] sm:$0xff] }
 0x3f3   : > { %v1592_v56 = vpop.f32.mrf.mxu2 }
 0x3f4   : > { %v1240_v17 = vmul.f32 0.22916667, %v1195_v47  ;;  %vm1224_vm7 = vcmp.ge.f32.partialorder %v1195_v47, 0.0  ;;  %2627 = vpow2.f32 %v2420_v41  ;;  %vm1706_vm3 = vweird.f32 %v3414_v16 }
 0x3f5   : > { %2629 = vpow2.f32 %v2421_v12 }
 0x3f6   : > { %v3376_v33 = vsel %vm1224_vm7, %v1195_v47, %v1240_v17  ;;  %v1163_v47 = vpop.f32.mrf.mxu0  ;;  %2631 = vrcp.f32 %v3414_v16 }
 0x3f7   : > { %v1272_v34 = vmul.f32 %v3376_v33, %v3376_v33 }
 0x3f9   : > { %v1197_v36 = vpop.f32.mrf.mxu1  ;;  %1295 = vadd.xlane.f32.xlu1 %v1272_v34 }
 0x3fa   : > { %v1198_v42 = vadd.f32 %v1197_v36, %v1148_v11 }
 0x3fb   : > { %v1594_v10 = vpop.f32.mrf.mxu2 }
 0x3fc   : > { %v1241_v43 = vmul.f32 0.22916667, %v1198_v42  ;;  %vm1225_vm8 = vcmp.ge.f32.partialorder %v1198_v42, 0.0 }
 0x3fe   : > { %v3380_v46 = vsel %vm1225_vm8, %v1198_v42, %v1241_v43 }
 0x3ff   : > { %v1273_v63 = vmul.f32 %v3380_v46, %v3380_v46 }
 0x401   : > { %v1199_v48 = vpop.f32.mrf.mxu1  ;;  %1297 = vadd.xlane.f32.xlu2 %v1273_v63  ;;  %v1593_v63 = vadd.f32 %v3391_v38, %v1592_v56 }
 0x402   : > { %v1200_v49 = vadd.f32 %v1199_v48, %v1150_v18  ;;  %v3418_v18 = vpop.eup %2625 }
 0x403   : > { %v2628_v31 = vpop.eup %2627  ;;  %v1687_v43 = vmul.f32 %v3418_v18, %v3406_v3  ;;  %vm1692_vm1 = vweird.f32 %v3418_v18 }
 0x404   : > { %v1242_v14 = vmul.f32 0.22916667, %v1200_v49  ;;  %vm1226_vm9 = vcmp.ge.f32.partialorder %v1200_v49, 0.0  ;;  %v3423_v45 = vadd.f32 1.0, %v2628_v31  ;;  %vm3454_vm2 = vmor %vm1691_vm0, %vm1692_vm1  ;;  %v1710_v31 = vand.u32 2147483647, %v3414_v16 }
 0x406   : > { %v3384_v19 = vsel %vm1226_vm9, %v1200_v49, %v1242_v14  ;;  %v2630_v49 = vpop.eup %2629  ;;  %2633 = vrcp.f32 %v3423_v45  ;;  %vm3489_vm7 = vcmp.eq.f32.partialorder %v1710_v31, 8.507059e+37  ;;  %vm1721_vm8 = vweird.f32 %v3423_v45 }
 0x407   : > { %v1274_v22 = vmul.f32 %v3384_v19, %v3384_v19  ;;  %v3430_v21 = vpop.eup %2631  ;;  %v3433_v44 = vadd.f32 1.0, %v2630_v49 }
 0x408   : > { %vm1707_vm5 = vweird.f32 %v3430_v21 }
 0x409   : > { %v1202_v20 = vpop.f32.mrf.mxu1  ;;  %1299 = vadd.xlane.f32.xlu0 %v1274_v22  ;;  %v1688_v22 = vsub.f32 1.0, %v1687_v43  ;;  %vm3482_vm6 = vmor %vm1706_vm3, %vm1707_vm5 }
 0x40a   : > { %v1203_v24 = vadd.f32 %v1202_v20, %v1153_v1  ;;  %v1597_v1 = vpop.f32.mrf.mxu2  ;;  %v1165_v20 = vpop.f32.mrf.mxu0 }
 0x40b   : > { %v1689_v28 = vmul.f32 %v3418_v18, %v1688_v22 }
 0x40c   : > { %v1243_v25 = vmul.f32 0.22916667, %v1203_v24  ;;  %vm1227_vm10 = vcmp.ge.f32.partialorder %v1203_v24, 0.0 }
 0x40e   : > { %v3394_v27 = vsel %vm1227_vm10, %v1203_v24, %v1243_v25  ;;  %v2422_v24 = vmul.f32 -1.442695, %v1593_v63 }
 0x40f   : > { %v1275_v26 = vmul.f32 %v3394_v27, %v3394_v27 }
 0x410   : > { %2635 = vpow2.f32 %v2422_v24 }
 0x411   : > { %v1204_v37 = vpop.f32.mrf.mxu1  ;;  %1301 = vadd.xlane.f32.xlu1 %v1275_v26  ;;  %v1702_v26 = vmul.f32 %v3430_v21, %v3414_v16  ;;  %2637 = vrcp.f32 %v3433_v44 }
 0x412   : > { %v1205_v39 = vadd.f32 %v1204_v37, %v1155_v23  ;;  %v1599_v56 = vpop.f32.mrf.mxu2 }
 0x414   : > { %v1244_v50 = vmul.f32 0.22916667, %v1205_v39  ;;  %vm1228_vm11 = vcmp.ge.f32.partialorder %v1205_v39, 0.0 }
 0x416   : > { %v3399_v52 = vsel %vm1228_vm11, %v1205_v39, %v1244_v50  ;;  %v3441_v50 = vpop.eup %2633 }
 0x417   : > { %v1276_v53 = vmul.f32 %v3399_v52, %v3399_v52  ;;  %vm1722_vm9 = vweird.f32 %v3441_v50 }
 0x419   : > { %v1207_v55 = vpop.f32.mrf.mxu1  ;;  %1303 = vadd.xlane.f32.xlu2 %v1276_v53  ;;  %v1697_v53 = vand.u32 2147483648, %v3406_v3 }
 0x41a   : > { %v1208_v57 = vadd.f32 %v1207_v55, %v1158_v32  ;;  %v1595_v32 = vadd.f32 %v3391_v38, %v1594_v10  ;;  %v1703_v55 = vsub.f32 1.0, %v1702_v26  ;;  %v1598_v10 = vadd.f32 %v3391_v38, %v1597_v1  ;;  %v3487_v22 = vpop.f32.mrf.mxu2 }
 0x41b   : > { %v1698_v41 = vor.u32 1.1754944e-38, %v1697_v53  ;;  %v1727_v53 = vand.u32 2147483648, %v3423_v45 }
 0x41c   : > { %v1245_v61 = vmul.f32 0.22916667, %v1208_v57  ;;  %vm1229_vm12 = vcmp.ge.f32.partialorder %v1208_v57, 0.0  ;;  %v2424_v1 = vmul.f32 -1.442695, %v1598_v10 }
 0x41d   : > { %v1728_v10 = vor.u32 1.1754944e-38, %v1727_v53 }
 0x41e   : > { %v3404_v0 = vsel %vm1229_vm12, %v1208_v57, %v1245_v61  ;;  %v1690_v57 = vadd.f32 %v3418_v18, %v1689_v28  ;;  %v1717_v61 = vmul.f32 %v3441_v50, %v3423_v45  ;;  %vm3511_vm12 = vmor %vm1721_vm8, %vm1722_vm9 }
 0x41f   : > { %v1277_v4 = vmul.f32 %v3404_v0, %v3404_v0 }
 0x420   : > { %v1694_v3 = vsel %vm3454_vm2, %v3418_v18, %v1690_v57  ;;  %v1718_v12 = vsub.f32 1.0, %v1717_v61 }
 0x421   : > { %v1209_v5 = vpop.f32.mrf.mxu1  ;;  %1305 = vadd.xlane.f32.xlu0 %v1277_v4  ;;  %v2636_v4 = vpop.eup %2635 }
 0x422   : > { %v1210_v8 = vadd.f32 %v1209_v5, %v1160_v62  ;;  %v2423_v62 = vmul.f32 -1.442695, %v1595_v32  ;;  %v1704_v5 = vmul.f32 %v3430_v21, %v1703_v55  ;;  %v3462_v6 = vpop.eup %2637 }
 0x424   : > { %v1246_v11 = vmul.f32 0.22916667, %v1210_v8  ;;  %vm1230_vm13 = vcmp.ge.f32.partialorder %v1210_v8, 0.0  ;;  %v1705_v18 = vadd.f32 %v3430_v21, %v1704_v5 }
 0x426   : > { %v3412_v15 = vsel %vm1230_vm13, %v1210_v8, %v1246_v11  ;;  %v1712_v8 = vand.u32 2147483648, %v3414_v16  ;;  %v1709_v16 = vsel %vm3482_vm6, %v3430_v21, %v1705_v18 }
 0x427   : > { %v1278_v17 = vmul.f32 %v3412_v15, %v3412_v15 }
 0x428   : > { %v1713_v49 = vor.u32 1.1754944e-38, %v1712_v8  ;;  %v1725_v8 = vand.u32 2147483647, %v3423_v45 }
 0x429   : > { %v1212_v34 = vpop.f32.mrf.mxu1  ;;  %1307 = vadd.xlane.f32.xlu1 %v1278_v17 }
 0x42a   : > { %v1213_v36 = vadd.f32 %v1212_v34, %v1163_v47  ;;  %v3474_v34 = vadd.f32 1.0, %v2636_v4  ;;  %vm3539_vm1 = vcmp.eq.f32.partialorder %v1725_v8, 8.507059e+37 }
 0x42c   : > { %v1247_v42 = vmul.f32 0.22916667, %v1213_v36  ;;  %vm1231_vm14 = vcmp.ge.f32.partialorder %v1213_v36, 0.0 }
 0x42e   : > { %v3426_v48 = vsel %vm1231_vm14, %v1213_v36, %v1247_v42  ;;  %v1699_v36 = vsel %vm1696_vm4, %v1698_v41, %v1694_v3  ;;  %v1732_v42 = vmul.f32 %v3462_v6, %v3433_v44  ;;  %vm1736_vm14 = vweird.f32 %v3433_v44 }
 0x42f   : > { %v1279_v14 = vmul.f32 %v3426_v48, %v3426_v48 }
 0x430   : > { %v1733_v26 = vsub.f32 1.0, %v1732_v42  ;;  %v1740_v42 = vand.u32 2147483647, %v3433_v44 }
 0x431   : > { %v1214_v23 = vpop.f32.mrf.mxu1  ;;  %1309 = vadd.xlane.f32.xlu2 %v1279_v14  ;;  %v1719_v14 = vmul.f32 %v3441_v50, %v1718_v12  ;;  %v1742_v12 = vand.u32 2147483648, %v3433_v44 }
 0x432   : > { %v1215_v25 = vadd.f32 %v1214_v23, %v1165_v20  ;;  %v1942_v20 = vsub.f32 1.0, %v1699_v36  ;;  %vm1741_vm5 = vcmp.eq.f32.partialorder %v1740_v42, 8.507059e+37 }
 0x433   : > { %v1720_v55 = vadd.f32 %v3441_v50, %v1719_v14  ;;  %v1743_v44 = vor.u32 1.1754944e-38, %v1742_v12 }
 0x434   : > { %v1248_v37 = vmul.f32 0.22916667, %v1215_v25  ;;  %v1282_v29 = vpop.xlane.xlu0 %1281  ;;  %vm1232_vm15 = vcmp.ge.f32.partialorder %v1215_v25, 0.0  ;;  %v1958_v61 = vmul.f32 %v2717_v60, %v1942_v20 }
 0x435   : > { %v3438_v39 = vmax.f32 %v1282_v29, 1e-24  ;;  %v1600_v29 = vadd.f32 %v3391_v38, %v1599_v56  ;;  %v1724_v18 = vsel %vm3511_vm12, %v3441_v50, %v1720_v55  ;;  %v2718_v55 = vld [vmem:[#allocation2] sm:$0xff] }
 0x436   : > { %v3445_v51 = vsel %vm1232_vm15, %v1215_v25, %v1248_v37  ;;  %vm1737_vm15 = vweird.f32 %v3462_v6 }
 0x437   : > { %2639 = vrsqrt.f32 %v3438_v39  ;;  %v1280_v35 = vmul.f32 %v3445_v51, %v3445_v51  ;;  %vm1335_vm11 = vweird.f32 %v3438_v39  ;;  %v2425_v3 = vmul.f32 -1.442695, %v1600_v29  ;;  %vm3549_vm2 = vmor %vm1736_vm14, %vm1737_vm15 }
 0x438   : > { %2641 = vpow2.f32 %v2423_v62  ;;  %v1714_v62 = vsel %vm3489_vm7, %v1713_v49, %v1709_v16  ;;  %vm1751_vm7 = vweird.f32 %v3474_v34 }
 0x439   : > { %1311 = vadd.xlane.f32.xlu0 %v1280_v35  ;;  %v1943_v14 = vsub.f32 1.0, %v1714_v62 }
 0x43c   : > { %v1284_v9 = vpop.xlane.xlu0 %1283 }
 0x43d   : > { %v2640_v11 = vpop.eup %2639  ;;  %v3470_v47 = vmax.f32 %v1284_v9, 1e-24 }
 0x43e   : > { %v1330_v17 = vmul.f32 %v2640_v11, %v3438_v39  ;;  %v2642_v25 = vpop.eup %2641  ;;  %vm1336_vm10 = vweird.f32 %v2640_v11  ;;  %v1734_v39 = vmul.f32 %v3462_v6, %v1733_v26  ;;  %v1603_v26 = vadd.f32 %v3391_v38, %v3487_v22 }
 0x43f   : > { %2643 = vrsqrt.f32 %v3470_v47  ;;  %v3515_v56 = vadd.f32 1.0, %v2642_v25  ;;  %vm1337_vm13 = vmor %vm1335_vm11, %vm1336_vm10  ;;  %vm1345_vm3 = vweird.f32 %v3470_v47 }
 0x440   : > { %v1331_v43 = vmul.f32 %v2640_v11, %v1330_v17  ;;  %2645 = vrcp.f32 %v3474_v34 }
 0x441   : > { %2647 = vpow2.f32 %v2424_v1  ;;  %v2719_v1 = vld [vmem:[#allocation2 + $0x58] sm:$0xff]  ;;  %v1772_v20 = vand.u32 2147483648, %v3515_v56  ;;  %vm1766_vm12 = vweird.f32 %v3515_v56 }
 0x442   : > { %v1332_v23 = vmul.f32 0.5, %v1331_v43  ;;  %v1604_v43 = vpop.f32.mrf.mxu2 }
 0x443   : > { %v1605_v12 = vadd.f32 %v3391_v38, %v1604_v43 }
 0x444   : > { %v1333_v28 = vsub.f32 1.5, %v1332_v23  ;;  %v1286_v37 = vpop.xlane.xlu1 %1285 }
 0x445   : > { %v3500_v32 = vpop.eup %2643  ;;  %v3504_v35 = vmax.f32 %v1286_v37, 1e-24 }
 0x446   : > { %v1334_v57 = vmul.f32 %v2640_v11, %v1333_v28  ;;  %v1340_v21 = vmul.f32 %v3500_v32, %v3470_v47  ;;  %v3522_v4 = vpop.eup %2645  ;;  %vm1346_vm0 = vweird.f32 %v3500_v32  ;;  %v1729_v28 = vsel %vm3539_vm1, %v1728_v10, %v1724_v18 }
 0x447   : > { %2649 = vrsqrt.f32 %v3504_v35  ;;  %v2648_v17 = vpop.eup %2647  ;;  %v1747_v45 = vmul.f32 %v3522_v4, %v3474_v34  ;;  %vm1347_vm4 = vmor %vm1345_vm3, %vm1346_vm0  ;;  %v1944_v60 = vsub.f32 1.0, %v1729_v28  ;;  %vm1752_vm8 = vweird.f32 %v3522_v4 }
 0x448   : > { %v1338_v41 = vsel %vm1337_vm13, %v2640_v11, %v1334_v57  ;;  %v1341_v5 = vmul.f32 %v3500_v32, %v1340_v21  ;;  %2651 = vrcp.f32 %v3515_v56  ;;  %v3555_v24 = vadd.f32 1.0, %v2648_v17  ;;  %vm3615_vm11 = vmor %vm1751_vm7, %vm1752_vm8 }
 0x449   : > { %v1489_v9 = vmul.f32 %v1338_v41, %v3345_v30  ;;  %v1735_v30 = vadd.f32 %v3462_v6, %v1734_v39  ;;  %2653 = vpow2.f32 %v2425_v3  ;;  %v1748_v37 = vsub.f32 1.0, %v1747_v45 }
 0x44a   : > { %v1342_v31 = vmul.f32 0.5, %v1341_v5  ;;  %v1959_v57 = vmul.f32 %v2718_v55, %v1943_v14  ;;  %v2426_v39 = vmul.f32 -1.442695, %v1603_v26  ;;  %v1607_v17 = vpop.f32.mrf.mxu2  ;;  %vm1355_vm9 = vweird.f32 %v3504_v35 }
 0x44b   : > { %v1926_v11 = vmul.f32 %v1699_v36, %v1489_v9  ;;  %v1739_v22 = vsel %vm3549_vm2, %v3462_v6, %v1735_v30 }
 0x44c   : > { %v1343_v63 = vsub.f32 1.5, %v1342_v31  ;;  %v1288_v50 = vpop.xlane.xlu1 %1287  ;;  %v3579_v5 = vsel %vm1741_vm5, %v1743_v44, %v1739_v22  ;;  %vm1781_vm5 = vweird.f32 %v3555_v24 }
 0x44d   : > { %v3543_v49 = vpop.eup %2649  ;;  %v1974_v36 = vadd.f32 %v1958_v61, %v1926_v11  ;;  %v3553_v23 = vmax.f32 %v1288_v50, 1e-24  ;;  %v1757_v11 = vand.u32 2147483648, %v3474_v34  ;;  %v1960_v50 = vmul.f32 %v2719_v1, %v1944_v60 }
 0x44e   : > { %v1344_v25 = vmul.f32 %v3500_v32, %v1343_v63  ;;  %v1350_v16 = vmul.f32 %v3543_v49, %v3504_v35  ;;  %v3568_v29 = vpop.eup %2651  ;;  %vm1356_vm6 = vweird.f32 %v3543_v49  ;;  %v1755_v63 = vand.u32 2147483647, %v3474_v34 }
 0x44f   : > { %1990 = vst [vmem:[#allocation2 + $0x30] sm:$0xff] %v1974_v36  ;;  %2655 = vrsqrt.f32 %v3553_v23  ;;  %v2654_v59 = vpop.eup %2653  ;;  %v1762_v8 = vmul.f32 %v3568_v29, %v3515_v56  ;;  %vm1357_vm10 = vmor %vm1355_vm9, %vm1356_vm6  ;;  %v1945_v14 = vsub.f32 1.0, %v3579_v5  ;;  %vm1767_vm15 = vweird.f32 %v3568_v29 }
 0x450   : > { %2006 = vst [vmem:[%s3232_s16] sm:$0xff] %v1974_v36  ;;  %v1348_v47 = vsel %vm1347_vm4, %v3500_v32, %v1344_v25  ;;  %v1351_v53 = vmul.f32 %v3543_v49, %v1350_v16  ;;  %2657 = vrcp.f32 %v3555_v24  ;;  %v1749_v32 = vmul.f32 %v3522_v4, %v1748_v37  ;;  %vm3645_vm2 = vmor %vm1766_vm12, %vm1767_vm15 }
 0x451   : > { %v1490_v21 = vmul.f32 %v1348_v47, %v3350_v40  ;;  %v3590_v10 = vadd.f32 1.0, %v2654_v59  ;;  %2659 = vpow2.f32 %v2426_v39  ;;  %v1763_v45 = vsub.f32 1.0, %v1762_v8 }
 0x452   : > { %v1352_v61 = vmul.f32 0.5, %v1351_v53  ;;  %v1750_v43 = vadd.f32 %v3522_v4, %v1749_v32  ;;  %v2427_v16 = vmul.f32 -1.442695, %v1605_v12  ;;  %vm1756_vm14 = vcmp.eq.f32.partialorder %v1755_v63, 8.507059e+37 }
 0x453   : > { %v1927_v41 = vmul.f32 %v1714_v62, %v1490_v21  ;;  %v1764_v44 = vmul.f32 %v3568_v29, %v1763_v45  ;;  %vm1365_vm0 = vweird.f32 %v3553_v23  ;;  %v1787_v1 = vand.u32 2147483648, %v3555_v24 }
 0x454   : > { %v1353_v6 = vsub.f32 1.5, %v1352_v61  ;;  %v1290_v40 = vpop.xlane.xlu2 %1289  ;;  %v1754_v34 = vsel %vm3615_vm11, %v3522_v4, %v1750_v43 }
 0x455   : > { %v3586_v3 = vpop.eup %2655  ;;  %v1975_v9 = vadd.f32 %v1959_v57, %v1927_v41  ;;  %v3588_v62 = vmax.f32 %v1290_v40, 1e-24  ;;  %v1765_v39 = vadd.f32 %v3568_v29, %v1764_v44  ;;  %v1609_v41 = vpop.f32.mrf.mxu2 }
 0x456   : > { %v1354_v31 = vmul.f32 %v3543_v49, %v1353_v6  ;;  %v1360_v18 = vmul.f32 %v3586_v3, %v3553_v23  ;;  %v3601_v30 = vpop.eup %2657  ;;  %vm1366_vm13 = vweird.f32 %v3586_v3 }
 0x457   : > { %1991 = vst [vmem:[#allocation2] sm:$0xff] %v1975_v9  ;;  %2661 = vrsqrt.f32 %v3588_v62  ;;  %v1777_v37 = vmul.f32 %v3601_v30, %v3555_v24  ;;  %v2660_v47 = vpop.eup %2659  ;;  %vm1367_vm1 = vmor %vm1365_vm0, %vm1366_vm13  ;;  %v1769_v43 = vsel %vm3645_vm2, %v3568_v29, %v1765_v39  ;;  %vm1375_vm6 = vweird.f32 %v3588_v62 }
 0x458   : > { %2007 = vst [vmem:[%s3232_s16 + $0x8] sm:$0xff] %v1975_v9  ;;  %v1358_v42 = vsel %vm1357_vm10, %v3543_v49, %v1354_v31  ;;  %v1361_v35 = vmul.f32 %v3586_v3, %v1360_v18  ;;  %2663 = vrcp.f32 %v3590_v10  ;;  %v3649_v40 = vadd.f32 1.0, %v2660_v47  ;;  %v2720_v9 = vld [vmem:[#allocation2 + $0x18] sm:$0xff] }
 0x459   : > { %v1491_v36 = vmul.f32 %v1358_v42, %v3354_v54  ;;  %v1758_v54 = vor.u32 1.1754944e-38, %v1757_v11  ;;  %2665 = vpow2.f32 %v2427_v16  ;;  %v1778_v61 = vsub.f32 1.0, %v1777_v37 }
 0x45a   : > { %v1362_v25 = vmul.f32 0.5, %v1361_v35  ;;  %v1961_v12 = vmul.f32 %v2720_v9, %v1945_v14  ;;  %v1608_v18 = vadd.f32 %v3391_v38, %v1607_v17  ;;  %v1773_v11 = vor.u32 1.1754944e-38, %v1772_v20 }
 0x45b   : > { %v1928_v26 = vmul.f32 %v1729_v28, %v1491_v36  ;;  %v1770_v28 = vand.u32 2147483647, %v3515_v56  ;;  %v1759_v4 = vsel %vm1756_vm14, %v1758_v54, %v1754_v34  ;;  %v1779_v35 = vmul.f32 %v3601_v30, %v1778_v61 }
 0x45c   : > { %v1363_v53 = vsub.f32 1.5, %v1362_v25  ;;  %v1292_v22 = vpop.xlane.xlu2 %1291  ;;  %v1946_v45 = vsub.f32 1.0, %v1759_v4  ;;  %v2428_v29 = vmul.f32 -1.442695, %v1608_v18  ;;  %vm1782_vm7 = vweird.f32 %v3601_v30 }
 0x45d   : > { %v2662_v55 = vpop.eup %2661  ;;  %v1976_v57 = vadd.f32 %v1960_v50, %v1928_v26  ;;  %v3630_v21 = vmax.f32 %v1292_v22, 1e-24  ;;  %vm3653_vm3 = vcmp.eq.f32.partialorder %v1770_v28, 8.507059e+37  ;;  %v1780_v44 = vadd.f32 %v3601_v30, %v1779_v35  ;;  %vm3687_vm9 = vmor %vm1781_vm5, %vm1782_vm7  ;;  %v1612_v22 = vpop.f32.mrf.mxu2 }
 0x45e   : > { %v1364_v59 = vmul.f32 %v3586_v3, %v1363_v53  ;;  %v1370_v60 = vmul.f32 %v2662_v55, %v3588_v62  ;;  %v3637_v32 = vpop.eup %2663  ;;  %vm1376_vm4 = vweird.f32 %v2662_v55  ;;  %v1785_v62 = vand.u32 2147483647, %v3555_v24 }
 0x45f   : > { %1992 = vst [vmem:[#allocation2 + $0x58] sm:$0xff] %v1976_v57  ;;  %2667 = vrsqrt.f32 %v3630_v21  ;;  %v2666_v63 = vpop.eup %2665  ;;  %vm1377_vm8 = vmor %vm1375_vm6, %vm1376_vm4  ;;  %v1774_v47 = vsel %vm3653_vm3, %v1773_v11, %v1769_v43  ;;  %v1610_v34 = vadd.f32 %v3391_v38, %v1609_v41  ;;  %vm1796_vm10 = vweird.f32 %v3590_v10 }
 0x460   : > { %2008 = vst [vmem:[%s3232_s16 + $0x10] sm:$0xff] %v1976_v57  ;;  %v1368_v8 = vsel %vm1367_vm1, %v3586_v3, %v1364_v59  ;;  %v1371_v6 = vmul.f32 %v2662_v55, %v1370_v60  ;;  %2669 = vrcp.f32 %v3649_v40  ;;  %v3676_v16 = vadd.f32 1.0, %v2666_v63  ;;  %v2721_v57 = vld [vmem:[#allocation2 + $0x50] sm:$0xff] }
 0x461   : > { %v1492_v31 = vmul.f32 %v1368_v8, %v3359_v58  ;;  %v1792_v58 = vmul.f32 %v3637_v32, %v3590_v10  ;;  %v1962_v28 = vmul.f32 %v2721_v57, %v1946_v45  ;;  %v1788_v59 = vor.u32 1.1754944e-38, %v1787_v1 }
 0x462   : > { %v1372_v3 = vmul.f32 0.5, %v1371_v6  ;;  %vm1797_vm11 = vweird.f32 %v3637_v32  ;;  %v1784_v39 = vsel %vm3687_vm9, %v3601_v30, %v1780_v44  ;;  %vm3702_vm13 = vcmp.eq.f32.partialorder %v1785_v62, 8.507059e+37 }
 0x463   : > { %v1929_v56 = vmul.f32 %v3579_v5, %v1492_v31  ;;  %v1793_v25 = vsub.f32 1.0, %v1792_v58  ;;  %v1947_v31 = vsub.f32 1.0, %v1774_v47  ;;  %vm1385_vm14 = vweird.f32 %v3630_v21  ;;  %vm3726_vm0 = vmor %vm1796_vm10, %vm1797_vm11 }
 0x464   : > { %v1373_v17 = vsub.f32 1.5, %v1372_v3  ;;  %v1294_v50 = vpop.xlane.xlu0 %1293  ;;  %v1802_v45 = vand.u32 2147483648, %v3590_v10  ;;  %v1800_v43 = vand.u32 2147483647, %v3590_v10  ;;  %v1613_v1 = vadd.f32 %v3391_v38, %v1612_v22 }
 0x465   : > { %v3666_v36 = vpop.eup %2667  ;;  %v1977_v5 = vadd.f32 %v1961_v12, %v1929_v56  ;;  %v3669_v14 = vmax.f32 %v1294_v50, 1e-24  ;;  %v1794_v61 = vmul.f32 %v3637_v32, %v1793_v25  ;;  %v2429_v12 = vmul.f32 -1.442695, %v1610_v34  ;;  %v2722_v50 = vld [vmem:[#allocation2 + $0x68] sm:$0xff] }
 0x466   : > { %v1374_v20 = vmul.f32 %v2662_v55, %v1373_v17  ;;  %v1380_v49 = vmul.f32 %v3666_v36, %v3630_v21  ;;  %vm1386_vm12 = vweird.f32 %v3666_v36  ;;  %v1789_v56 = vsel %vm3702_vm13, %v1788_v59, %v1784_v39 }
 0x467   : > { %1993 = vst [vmem:[#allocation2 + $0x18] sm:$0xff] %v1977_v5  ;;  %2671 = vrsqrt.f32 %v3669_v14  ;;  %vm1387_vm15 = vmor %vm1385_vm14, %vm1386_vm12  ;;  %v1795_v3 = vadd.f32 %v3637_v32, %v1794_v61  ;;  %v1948_v25 = vsub.f32 1.0, %v1789_v56  ;;  %vm3740_vm2 = vcmp.eq.f32.partialorder %v1800_v43, 8.507059e+37 }
 0x468   : > { %2009 = vst [vmem:[%s3232_s16 + $0x18] sm:$0xff] %v1977_v5  ;;  %v1378_v26 = vsel %vm1377_vm8, %v2662_v55, %v1374_v20  ;;  %v1381_v54 = vmul.f32 %v3666_v36, %v1380_v49  ;;  %2673 = vpow2.f32 %v2428_v29  ;;  %v3692_v55 = vpop.eup %2669  ;;  %v1803_v49 = vor.u32 1.1754944e-38, %v1802_v45 }
 0x469   : > { %v1493_v37 = vmul.f32 %v1378_v26, %v3363_v2  ;;  %2675 = vrcp.f32 %v3676_v16  ;;  %v1807_v23 = vmul.f32 %v3692_v55, %v3649_v40  ;;  %v1799_v10 = vsel %vm3726_vm0, %v3637_v32, %v1795_v3  ;;  %v1614_v26 = vpop.f32.mrf.mxu2 }
 0x46a   : > { %v1382_v60 = vmul.f32 0.5, %v1381_v54  ;;  %v2430_v22 = vmul.f32 -1.442695, %v1613_v1  ;;  %vm1395_vm3 = vweird.f32 %v3669_v14  ;;  %vm1811_vm5 = vweird.f32 %v3649_v40 }
 0x46b   : > { %v1930_v2 = vmul.f32 %v1759_v4, %v1493_v37  ;;  %v1808_v17 = vsub.f32 1.0, %v1807_v23  ;;  %v1804_v59 = vsel %vm3740_vm2, %v1803_v49, %v1799_v10  ;;  %vm1812_vm6 = vweird.f32 %v3692_v55 }
 0x46c   : > { %v1383_v24 = vsub.f32 1.5, %v1382_v60  ;;  %v1296_v8 = vpop.xlane.xlu1 %1295  ;;  %v1815_v61 = vand.u32 2147483647, %v3649_v40  ;;  %vm3765_vm7 = vmor %vm1811_vm5, %vm1812_vm6  ;;  %vm1826_vm8 = vweird.f32 %v3676_v16 }
 0x46d   : > { %v2672_v4 = vpop.eup %2671  ;;  %v1978_v6 = vadd.f32 %v1962_v28, %v1930_v2  ;;  %v3708_v9 = vmax.f32 %v1296_v8, 1e-24  ;;  %v1809_v53 = vmul.f32 %v3692_v55, %v1808_v17  ;;  %v2723_v8 = vld [vmem:[#allocation2 + $0x8] sm:$0xff] }
 0x46e   : > { %v1384_v18 = vmul.f32 %v3666_v36, %v1383_v24  ;;  %v1390_v30 = vmul.f32 %v2672_v4, %v3669_v14  ;;  %v2674_v11 = vpop.eup %2673  ;;  %vm1396_vm1 = vweird.f32 %v2672_v4  ;;  %v1817_v14 = vand.u32 2147483648, %v3649_v40 }
 0x46f   : > { %1994 = vst [vmem:[#allocation2 + $0x50] sm:$0xff] %v1978_v6  ;;  %2677 = vrsqrt.f32 %v3708_v9  ;;  %v3731_v58 = vpop.eup %2675  ;;  %v3735_v29 = vadd.f32 1.0, %v2674_v11  ;;  %vm1397_vm4 = vmor %vm1395_vm3, %vm1396_vm1  ;;  %v1810_v41 = vadd.f32 %v3692_v55, %v1809_v53  ;;  %vm3775_vm10 = vcmp.eq.f32.partialorder %v1815_v61, 8.507059e+37 }
 0x470   : > { %2010 = vst [vmem:[%s3232_s16 + $0x20] sm:$0xff] %v1978_v6  ;;  %v1388_v42 = vsel %vm1387_vm15, %v3666_v36, %v1384_v18  ;;  %v1391_v21 = vmul.f32 %v2672_v4, %v1390_v30  ;;  %2679 = vpow2.f32 %v2429_v12  ;;  %v1963_v36 = vmul.f32 %v2722_v50, %v1947_v31 }
 0x471   : > { %v1494_v63 = vmul.f32 %v1388_v42, %v3368_v7  ;;  %v1822_v44 = vmul.f32 %v3731_v58, %v3676_v16  ;;  %2681 = vrcp.f32 %v3735_v29  ;;  %v1964_v6 = vmul.f32 %v2723_v8, %v1948_v25 }
 0x472   : > { %v1392_v5 = vmul.f32 0.5, %v1391_v21  ;;  %v1949_v18 = vsub.f32 1.0, %v1804_v59  ;;  %v1818_v11 = vor.u32 1.1754944e-38, %v1817_v14  ;;  %v1814_v35 = vsel %vm3765_vm7, %v3692_v55, %v1810_v41 }
 0x473   : > { %v1931_v20 = vmul.f32 %v1774_v47, %v1494_v63  ;;  %v1823_v39 = vsub.f32 1.0, %v1822_v44  ;;  %v1617_v63 = vpop.f32.mrf.mxu2  ;;  %vm1405_vm11 = vweird.f32 %v3708_v9  ;;  %vm1827_vm13 = vweird.f32 %v3731_v58 }
 0x474   : > { %v1393_v54 = vsub.f32 1.5, %v1392_v5  ;;  %v1298_v62 = vpop.xlane.xlu2 %1297  ;;  %v1819_v25 = vsel %vm3775_vm10, %v1818_v11, %v1814_v35  ;;  %vm3806_vm14 = vmor %vm1826_vm8, %vm1827_vm13  ;;  %v1618_v53 = vadd.f32 %v3391_v38, %v1617_v63  ;;  %vm1841_vm3 = vweird.f32 %v3735_v29 }
 0x475   : > { %v2678_v37 = vpop.eup %2677  ;;  %v1979_v47 = vadd.f32 %v1963_v36, %v1931_v20  ;;  %v3747_v34 = vmax.f32 %v1298_v62, 1e-24  ;;  %v1847_v11 = vand.u32 2147483648, %v3735_v29 }
 0x476   : > { %v1394_v32 = vmul.f32 %v2672_v4, %v1393_v54  ;;  %v1400_v57 = vmul.f32 %v2678_v37, %v3708_v9  ;;  %v2680_v28 = vpop.eup %2679  ;;  %vm1406_vm9 = vweird.f32 %v2678_v37  ;;  %v1832_v9 = vand.u32 2147483648, %v3676_v16  ;;  %v2724_v54 = vld [vmem:[#allocation2 + $0x48] sm:$0xff] }
 0x477   : > { %1995 = vst [vmem:[#allocation2 + $0x68] sm:$0xff] %v1979_v47  ;;  %2683 = vrsqrt.f32 %v3747_v34  ;;  %v3773_v30 = vpop.eup %2681  ;;  %vm1407_vm12 = vmor %vm1405_vm11, %vm1406_vm9  ;;  %v1965_v7 = vmul.f32 %v2724_v54, %v1949_v18  ;;  %vm1415_vm1 = vweird.f32 %v3747_v34  ;;  %v2432_v8 = vmul.f32 -1.442695, %v1618_v53 }
 0x478   : > { %2011 = vst [vmem:[%s3232_s16 + $0x28] sm:$0xff] %v1979_v47  ;;  %v1398_v60 = vsel %vm1397_vm4, %v2672_v4, %v1394_v32  ;;  %v1401_v2 = vmul.f32 %v2678_v37, %v1400_v57  ;;  %2685 = vpow2.f32 %v2430_v22  ;;  %v3769_v4 = vadd.f32 1.0, %v2680_v28 }
 0x479   : > { %v1495_v24 = vmul.f32 %v1398_v60, %v3372_v13  ;;  %v1615_v13 = vadd.f32 %v3391_v38, %v1614_v26  ;;  %v1837_v36 = vmul.f32 %v3773_v30, %v3735_v29  ;;  %v1830_v26 = vand.u32 2147483647, %v3676_v16 }
 0x47a   : > { %v1402_v23 = vmul.f32 0.5, %v1401_v2  ;;  %2687 = vrcp.f32 %v3769_v4  ;;  %v1833_v32 = vor.u32 1.1754944e-38, %v1832_v9  ;;  %v1950_v57 = vsub.f32 1.0, %v1819_v25 }
 0x47b   : > { %v1932_v31 = vmul.f32 %v1789_v56, %v1495_v24  ;;  %v1824_v56 = vmul.f32 %v3731_v58, %v1823_v39  ;;  %v2431_v55 = vmul.f32 -1.442695, %v1615_v13  ;;  %vm3819_vm0 = vcmp.eq.f32.partialorder %v1830_v26, 8.507059e+37 }
 0x47c   : > { %v1403_v45 = vsub.f32 1.5, %v1402_v23  ;;  %v1300_v40 = vpop.xlane.xlu0 %1299  ;;  %v2725_v23 = vld [vmem:[#allocation2 + $0x40] sm:$0xff]  ;;  %vm1842_vm4 = vweird.f32 %v3773_v30  ;;  %vm1856_vm10 = vweird.f32 %v3769_v4 }
 0x47d   : > { %v3779_v42 = vpop.eup %2683  ;;  %v1980_v21 = vadd.f32 %v1964_v6, %v1932_v31  ;;  %v3785_v43 = vmax.f32 %v1300_v40, 1e-24  ;;  %v1825_v10 = vadd.f32 %v3731_v58, %v1824_v56  ;;  %v1619_v6 = vpop.f32.mrf.mxu2  ;;  %v1966_v12 = vmul.f32 %v2725_v23, %v1950_v57  ;;  %vm3846_vm6 = vmor %vm1841_vm3, %vm1842_vm4 }
 0x47e   : > { %v1404_v17 = vmul.f32 %v2678_v37, %v1403_v45  ;;  %v1410_v1 = vmul.f32 %v3779_v42, %v3747_v34  ;;  %v2686_v50 = vpop.eup %2685  ;;  %vm1416_vm15 = vweird.f32 %v3779_v42  ;;  %v1845_v40 = vand.u32 2147483647, %v3735_v29 }
 0x47f   : > { %1996 = vst [vmem:[#allocation2 + $0x8] sm:$0xff] %v1980_v21  ;;  %2689 = vrsqrt.f32 %v3785_v43  ;;  %v1829_v2 = vsel %vm3806_vm14, %v3731_v58, %v1825_v10  ;;  %vm1417_vm2 = vmor %vm1415_vm1, %vm1416_vm15  ;;  %vm1425_vm7 = vweird.f32 %v3785_v43 }
 0x480   : > { %2012 = vst [vmem:[%s3232_s16 + $0x30] sm:$0xff] %v1980_v21  ;;  %v1408_v5 = vsel %vm1407_vm12, %v2678_v37, %v1404_v17  ;;  %v1411_v20 = vmul.f32 %v3779_v42, %v1410_v1  ;;  %v3810_v37 = vadd.f32 1.0, %v2686_v50  ;;  %2691 = vpow2.f32 %v2431_v55  ;;  %v3813_v22 = vpop.eup %2687 }
 0x481   : > { %v1496_v49 = vmul.f32 %v1408_v5, %v3376_v33  ;;  %v1838_v33 = vsub.f32 1.0, %v1837_v36  ;;  %v1852_v58 = vmul.f32 %v3813_v22, %v3769_v4  ;;  %v1834_v45 = vsel %vm3819_vm0, %v1833_v32, %v1829_v2 }
 0x482   : > { %v1412_v44 = vmul.f32 0.5, %v1411_v20  ;;  %2693 = vrcp.f32 %v3810_v37  ;;  %v1620_v21 = vadd.f32 %v3391_v38, %v1619_v6  ;;  %v1848_v38 = vor.u32 1.1754944e-38, %v1847_v11 }
 0x483   : > { %v1933_v47 = vmul.f32 %v1804_v59, %v1496_v49  ;;  %v1839_v41 = vmul.f32 %v3773_v30, %v1838_v33  ;;  %v1951_v55 = vsub.f32 1.0, %v1834_v45  ;;  %vm3855_vm8 = vcmp.eq.f32.partialorder %v1845_v40, 8.507059e+37 }
 0x484   : > { %v1413_v28 = vsub.f32 1.5, %v1412_v44  ;;  %v1302_v60 = vpop.xlane.xlu1 %1301  ;;  %v2433_v26 = vmul.f32 -1.442695, %v1620_v21  ;;  %vm1857_vm11 = vweird.f32 %v3813_v22  ;;  %v1862_v33 = vand.u32 2147483648, %v3769_v4 }
 0x485   : > { %v2690_v16 = vpop.eup %2689  ;;  %v1981_v14 = vadd.f32 %v1965_v7, %v1933_v47  ;;  %v3823_v61 = vmax.f32 %v1302_v60, 1e-24  ;;  %v1840_v35 = vadd.f32 %v3773_v30, %v1839_v41  ;;  %v2726_v47 = vld [vmem:[#allocation2 + $0x20] sm:$0xff]  ;;  %v1860_v32 = vand.u32 2147483647, %v3769_v4  ;;  %vm3877_vm13 = vmor %vm1856_vm10, %vm1857_vm11 }
 0x486   : > { %v1414_v24 = vmul.f32 %v3779_v42, %v1413_v28  ;;  %v1420_v39 = vmul.f32 %v2690_v16, %v3785_v43  ;;  %v2692_v18 = vpop.eup %2691  ;;  %vm1426_vm5 = vweird.f32 %v2690_v16  ;;  %v1863_v23 = vor.u32 1.1754944e-38, %v1862_v33 }
 0x487   : > { %1997 = vst [vmem:[#allocation2 + $0x48] sm:$0xff] %v1981_v14  ;;  %2695 = vrsqrt.f32 %v3823_v61  ;;  %v3850_v50 = vadd.f32 1.0, %v2692_v18  ;;  %vm1427_vm9 = vmor %vm1425_vm7, %vm1426_vm5  ;;  %v1844_v10 = vsel %vm3846_vm6, %v3773_v30, %v1840_v35  ;;  %v1967_v30 = vmul.f32 %v2726_v47, %v1951_v55  ;;  %v2728_v47 = vld [vmem:[#allocation2 + $0x38] sm:$0xff] }
 0x488   : > { %2013 = vst [vmem:[%s3232_s16 + $0x38] sm:$0xff] %v1981_v14  ;;  %v1418_v34 = vsel %vm1417_vm2, %v3779_v42, %v1414_v24  ;;  %v1421_v31 = vmul.f32 %v2690_v16, %v1420_v39  ;;  %v1853_v42 = vsub.f32 1.0, %v1852_v58  ;;  %2697 = vpow2.f32 %v2432_v8 }
 0x489   : > { %v1497_v13 = vmul.f32 %v1418_v34, %v3380_v46  ;;  %v3844_v46 = vpop.eup %2693  ;;  %v1849_v28 = vsel %vm3855_vm8, %v1848_v38, %v1844_v10  ;;  %vm1435_vm14 = vweird.f32 %v3823_v61  ;;  %vm3893_vm0 = vcmp.eq.f32.partialorder %v1860_v32, 8.507059e+37 }
 0x48a   : > { %v1422_v3 = vmul.f32 0.5, %v1421_v31  ;;  %v1867_v7 = vmul.f32 %v3844_v46, %v3810_v37  ;;  %v1952_v58 = vsub.f32 1.0, %v1849_v28  ;;  %vm1871_vm1 = vweird.f32 %v3810_v37 }
 0x48b   : > { %v1934_v56 = vmul.f32 %v1819_v25, %v1497_v13  ;;  %v1854_v25 = vmul.f32 %v3813_v22, %v1853_v42  ;;  %vm1872_vm2 = vweird.f32 %v3844_v46  ;;  %v1875_v35 = vand.u32 2147483647, %v3810_v37 }
 0x48c   : > { %v1423_v63 = vsub.f32 1.5, %v1422_v3  ;;  %v1304_v1 = vpop.xlane.xlu2 %1303  ;;  %vm3915_vm4 = vmor %vm1871_vm1, %vm1872_vm2  ;;  %vm1886_vm8 = vweird.f32 %v3850_v50 }
 0x48d   : > { %v2696_v29 = vpop.eup %2695  ;;  %v1982_v36 = vadd.f32 %v1966_v12, %v1934_v56  ;;  %v3852_v5 = vmax.f32 %v1304_v1, 1e-24  ;;  %v1855_v60 = vadd.f32 %v3813_v22, %v1854_v25  ;;  %v1877_v56 = vand.u32 2147483648, %v3810_v37 }
 0x48e   : > { %v1424_v9 = vmul.f32 %v2690_v16, %v1423_v63  ;;  %v1430_v49 = vmul.f32 %v2696_v29, %v3823_v61  ;;  %v2698_v44 = vpop.eup %2697  ;;  %vm1436_vm12 = vweird.f32 %v2696_v29  ;;  %vm1876_vm7 = vcmp.eq.f32.partialorder %v1875_v35, 8.507059e+37 }
 0x48f   : > { %1998 = vst [vmem:[#allocation2 + $0x40] sm:$0xff] %v1982_v36  ;;  %2699 = vrsqrt.f32 %v3852_v5  ;;  %v3881_v59 = vadd.f32 1.0, %v2698_v44  ;;  %vm1437_vm15 = vmor %vm1435_vm14, %vm1436_vm12  ;;  %v1859_v12 = vsel %vm3877_vm13, %v3813_v22, %v1855_v60  ;;  %v2727_v22 = vld [vmem:[#allocation2 + $0x10] sm:$0xff]  ;;  %vm1445_vm5 = vweird.f32 %v3852_v5 }
 0x490   : > { %2014 = vst [vmem:[%s3232_s16 + $0x40] sm:$0xff] %v1982_v36  ;;  %v1428_v54 = vsel %vm1427_vm9, %v2690_v16, %v1424_v9  ;;  %v1431_v43 = vmul.f32 %v2696_v29, %v1430_v49  ;;  %2701 = vrcp.f32 %v3850_v50  ;;  %v1968_v3 = vmul.f32 %v2727_v22, %v1952_v58 }
 0x491   : > { %v1498_v62 = vmul.f32 %v1428_v54, %v3384_v19  ;;  %2703 = vpow2.f32 %v2433_v26  ;;  %v1868_v19 = vsub.f32 1.0, %v1867_v7  ;;  %v1864_v42 = vsel %vm3893_vm0, %v1863_v23, %v1859_v12 }
 0x492   : > { %v1432_v53 = vmul.f32 0.5, %v1431_v43  ;;  %v1878_v10 = vor.u32 1.1754944e-38, %v1877_v56  ;;  %v1953_v26 = vsub.f32 1.0, %v1864_v42 }
 0x493   : > { %v1935_v57 = vmul.f32 %v1834_v45, %v1498_v62  ;;  %v1869_v61 = vmul.f32 %v3844_v46, %v1868_v19 }
 0x494   : > { %v1433_v16 = vsub.f32 1.5, %v1432_v53  ;;  %v1306_v2 = vpop.xlane.xlu0 %1305 }
 0x495   : > { %v2700_v24 = vpop.eup %2699  ;;  %v1983_v4 = vadd.f32 %v1967_v30, %v1935_v57  ;;  %v3883_v39 = vmax.f32 %v1306_v2, 1e-24  ;;  %v1969_v30 = vmul.f32 %v2728_v47, %v1953_v26 }
 0x496   : > { %v3885_v41 = vpop.eup %2701  ;;  %v1434_v8 = vmul.f32 %v2696_v29, %v1433_v16  ;;  %v1440_v6 = vmul.f32 %v2700_v24, %v3852_v5  ;;  %vm1446_vm3 = vweird.f32 %v2700_v24 }
 0x497   : > { %1999 = vst [vmem:[#allocation2 + $0x20] sm:$0xff] %v1983_v4  ;;  %2705 = vrsqrt.f32 %v3883_v39  ;;  %v2704_v13 = vpop.eup %2703  ;;  %v1882_v45 = vmul.f32 %v3885_v41, %v3850_v50  ;;  %vm1447_vm6 = vmor %vm1445_vm5, %vm1446_vm3  ;;  %vm1887_vm9 = vweird.f32 %v3885_v41  ;;  %vm1455_vm11 = vweird.f32 %v3883_v39 }
 0x498   : > { %2015 = vst [vmem:[%s3232_s16 + $0x48] sm:$0xff] %v1983_v4  ;;  %v1438_v31 = vsel %vm1437_vm15, %v2696_v29, %v1434_v8  ;;  %v1441_v18 = vmul.f32 %v2700_v24, %v1440_v6  ;;  %2707 = vrcp.f32 %v3881_v59  ;;  %v3911_v1 = vadd.f32 1.0, %v2704_v13  ;;  %vm3950_vm12 = vmor %vm1886_vm8, %vm1887_vm9 }
 0x499   : > { %v1499_v11 = vmul.f32 %v1438_v31, %v3394_v27  ;;  %v1870_v27 = vadd.f32 %v3844_v46, %v1869_v61  ;;  %v1883_v38 = vsub.f32 1.0, %v1882_v45  ;;  %v2729_v61 = vld [vmem:[#allocation2 + $0x60] sm:$0xff]  ;;  %vm1901_vm15 = vweird.f32 %v3881_v59 }
 0x49a   : > { %v1442_v40 = vmul.f32 0.5, %v1441_v18  ;;  %v1907_v45 = vand.u32 2147483648, %v3881_v59 }
 0x49b   : > { %v1936_v21 = vmul.f32 %v1849_v28, %v1499_v11  ;;  %v1874_v54 = vsel %vm3915_vm4, %v3844_v46, %v1870_v27  ;;  %v1884_v7 = vmul.f32 %v3885_v41, %v1883_v38  ;;  %v1892_v46 = vand.u32 2147483648, %v3850_v50 }
 0x49c   : > { %v1443_v63 = vsub.f32 1.5, %v1442_v40  ;;  %v1308_v17 = vpop.xlane.xlu1 %1307  ;;  %v1879_v53 = vsel %vm1876_vm7, %v1878_v10, %v1874_v54  ;;  %v1908_v38 = vor.u32 1.1754944e-38, %v1907_v45  ;;  %v2730_v10 = vld [vmem:[#allocation2 + $0x70] sm:$0xff]  ;;  %v1922_v54 = vand.u32 2147483648, %v3911_v1 }
 0x49d   : > { %v2706_v29 = vpop.eup %2705  ;;  %v1984_v36 = vadd.f32 %v1968_v3, %v1936_v21  ;;  %v3919_v9 = vmax.f32 %v1308_v17, 1e-24  ;;  %v1885_v19 = vadd.f32 %v3885_v41, %v1884_v7  ;;  %v1893_v23 = vor.u32 1.1754944e-38, %v1892_v46 }
 0x49e   : > { %v3921_v20 = vpop.eup %2707  ;;  %v1444_v49 = vmul.f32 %v2700_v24, %v1443_v63  ;;  %v1450_v25 = vmul.f32 %v2706_v29, %v3883_v39  ;;  %vm1456_vm10 = vweird.f32 %v2706_v29  ;;  %v1905_v3 = vand.u32 2147483647, %v3881_v59 }
 0x49f   : > { %2000 = vst [vmem:[#allocation2 + $0x10] sm:$0xff] %v1984_v36  ;;  %2709 = vrsqrt.f32 %v3919_v9  ;;  %v1897_v44 = vmul.f32 %v3921_v20, %v3881_v59  ;;  %vm1457_vm13 = vmor %vm1455_vm11, %vm1456_vm10  ;;  %v1889_v34 = vsel %vm3950_vm12, %v3885_v41, %v1885_v19  ;;  %vm1902_vm0 = vweird.f32 %v3921_v20 }
 0x4a0   : > { %2016 = vst [vmem:[%s3232_s16 + $0x50] sm:$0xff] %v1984_v36  ;;  %v1448_v37 = vsel %vm1447_vm6, %v2700_v24, %v1444_v49  ;;  %v1451_v43 = vmul.f32 %v2706_v29, %v1450_v25  ;;  %2711 = vrcp.f32 %v3911_v1  ;;  %v1954_v24 = vsub.f32 1.0, %v1879_v53  ;;  %vm3973_vm3 = vmor %vm1901_vm15, %vm1902_vm0 }
 0x4a1   : > { %v1500_v5 = vmul.f32 %v1448_v37, %v3399_v52  ;;  %v1890_v52 = vand.u32 2147483647, %v3850_v50  ;;  %v1898_v16 = vsub.f32 1.0, %v1897_v44  ;;  %vm1465_vm2 = vweird.f32 %v3919_v9 }
 0x4a2   : > { %v1452_v62 = vmul.f32 0.5, %v1451_v43  ;;  %v1970_v18 = vmul.f32 %v2729_v61, %v1954_v24  ;;  %vm1906_vm5 = vcmp.eq.f32.partialorder %v1905_v3, 8.507059e+37  ;;  %vm1916_vm6 = vweird.f32 %v3911_v1 }
 0x4a3   : > { %v1937_v33 = vmul.f32 %v1864_v42, %v1500_v5  ;;  %vm1891_vm14 = vcmp.eq.f32.partialorder %v1890_v52, 8.507059e+37  ;;  %v1899_v50 = vmul.f32 %v3921_v20, %v1898_v16  ;;  %v1923_v46 = vor.u32 1.1754944e-38, %v1922_v54 }
 0x4a4   : > { %v1453_v32 = vsub.f32 1.5, %v1452_v62  ;;  %v1310_v57 = vpop.xlane.xlu2 %1309 }
 0x4a5   : > { %v2710_v28 = vpop.eup %2709  ;;  %v1985_v60 = vadd.f32 %v1969_v30, %v1937_v33  ;;  %v3941_v14 = vmax.f32 %v1310_v57, 1e-24  ;;  %v1900_v42 = vadd.f32 %v3921_v20, %v1899_v50 }
 0x4a6   : > { %v3943_v2 = vpop.eup %2711  ;;  %v1454_v4 = vmul.f32 %v2706_v29, %v1453_v32  ;;  %v1460_v8 = vmul.f32 %v2710_v28, %v3919_v9  ;;  %vm1466_vm1 = vweird.f32 %v2710_v28 }
 0x4a7   : > { %2001 = vst [vmem:[#allocation2 + $0x38] sm:$0xff] %v1985_v60  ;;  %2713 = vrsqrt.f32 %v3941_v14  ;;  %v1912_v31 = vmul.f32 %v3943_v2, %v3911_v1  ;;  %vm1467_vm4 = vmor %vm1465_vm2, %vm1466_vm1  ;;  %v1904_v59 = vsel %vm3973_vm3, %v3921_v20, %v1900_v42  ;;  %vm1917_vm7 = vweird.f32 %v3943_v2 }
 0x4a8   : > { %2017 = vst [vmem:[%s3232_s16 + $0x58] sm:$0xff] %v1985_v60  ;;  %v1458_v6 = vsel %vm1457_vm13, %v2706_v29, %v1454_v4  ;;  %v1461_v39 = vmul.f32 %v2710_v28, %v1460_v8  ;;  %v1909_v43 = vsel %vm1906_vm5, %v1908_v38, %v1904_v59  ;;  %v1920_v20 = vand.u32 2147483647, %v3911_v1  ;;  %vm3990_vm10 = vmor %vm1916_vm6, %vm1917_vm7  ;;  %v2732_v8 = vld [vmem:[#allocation2 + $0x28] sm:$0xff] }
 0x4a9   : > { %v1501_v12 = vmul.f32 %v1458_v6, %v3404_v0  ;;  %v1894_v0 = vsel %vm1891_vm14, %v1893_v23, %v1889_v34  ;;  %v1913_v56 = vsub.f32 1.0, %v1912_v31  ;;  %vm1475_vm9 = vweird.f32 %v3941_v14 }
 0x4aa   : > { %v1462_v13 = vmul.f32 0.5, %v1461_v39  ;;  %v1955_v29 = vsub.f32 1.0, %v1894_v0  ;;  %v1956_v33 = vsub.f32 1.0, %v1909_v43  ;;  %vm1921_vm12 = vcmp.eq.f32.partialorder %v1920_v20, 8.507059e+37 }
 0x4ab   : > { %v1938_v11 = vmul.f32 %v1879_v53, %v1501_v12  ;;  %v1914_v9 = vmul.f32 %v3943_v2, %v1913_v56 }
 0x4ac   : > { %v1463_v22 = vsub.f32 1.5, %v1462_v13  ;;  %v1312_v41 = vpop.xlane.xlu0 %1311  ;;  %v1971_v26 = vmul.f32 %v2730_v10, %v1955_v29 }
 0x4ad   : > { %v2714_v40 = vpop.eup %2713  ;;  %v1986_v21 = vadd.f32 %v1970_v18, %v1938_v11  ;;  %v1328_v35 = vmax.f32 %v1312_v41, 1e-24  ;;  %v1915_v44 = vadd.f32 %v3943_v2, %v1914_v9 }
 0x4ae   : > { %v1464_v63 = vmul.f32 %v2710_v28, %v1463_v22  ;;  %v1470_v17 = vmul.f32 %v2714_v40, %v3941_v14  ;;  %vm1476_vm8 = vweird.f32 %v2714_v40 }
 0x4af   : > { %2002 = vst [vmem:[#allocation2 + $0x60] sm:$0xff] %v1986_v21  ;;  %2715 = vrsqrt.f32 %v1328_v35  ;;  %vm1477_vm11 = vmor %vm1475_vm9, %vm1476_vm8  ;;  %v1919_v1 = vsel %vm3990_vm10, %v3943_v2, %v1915_v44  ;;  %vm1485_vm14 = vweird.f32 %v1328_v35 }
 0x4b0   : > { %2018 = vst [vmem:[%s3232_s16 + $0x60] sm:$0xff] %v1986_v21  ;;  %v1468_v36 = vsel %vm1467_vm4, %v2710_v28, %v1464_v63  ;;  %v1471_v55 = vmul.f32 %v2714_v40, %v1470_v17  ;;  %v2731_v28 = vld [vmem:[#allocation2 + $0x78] sm:$0xff]  ;;  %v1924_v19 = vsel %vm1921_vm12, %v1923_v46, %v1919_v1 }
 0x4b1   : > { %v1502_v49 = vmul.f32 %v1468_v36, %v3412_v15  ;;  %v1972_v60 = vmul.f32 %v2731_v28, %v1956_v33 }
 0x4b2   : > { %v1472_v25 = vmul.f32 0.5, %v1471_v55 }
 0x4b3   : > { %v1939_v37 = vmul.f32 %v1894_v0, %v1502_v49 }
 0x4b4   : > { %v1473_v15 = vsub.f32 1.5, %v1472_v25 }
 0x4b5   : > { %v2716_v5 = vpop.eup %2715  ;;  %v1987_v7 = vadd.f32 %v1971_v26, %v1939_v37 }
 0x4b6   : > { %v1474_v62 = vmul.f32 %v2714_v40, %v1473_v15  ;;  %v1480_v30 = vmul.f32 %v2716_v5, %v1328_v35  ;;  %vm1486_vm13 = vweird.f32 %v2716_v5 }
 0x4b7   : > { %2003 = vst [vmem:[#allocation2 + $0x70] sm:$0xff] %v1987_v7  ;;  %vm1487_vm15 = vmor %vm1485_vm14, %vm1486_vm13 }
 0x4b8   : > { %2019 = vst [vmem:[%s3232_s16 + $0x68] sm:$0xff] %v1987_v7  ;;  %v1478_v53 = vsel %vm1477_vm11, %v2714_v40, %v1474_v62  ;;  %v1481_v32 = vmul.f32 %v2716_v5, %v1480_v30 }
 0x4b9   : > { %v1503_v52 = vmul.f32 %v1478_v53, %v3426_v48  ;;  %v1957_v48 = vsub.f32 1.0, %v1924_v19 }
 0x4ba   : > { %v1482_v57 = vmul.f32 0.5, %v1481_v32 }
 0x4bb   : > { %v1940_v16 = vmul.f32 %v1909_v43, %v1503_v52  ;;  %v1973_v6 = vmul.f32 %v2732_v8, %v1957_v48 }
 0x4bc   : > { %v1483_v14 = vsub.f32 1.5, %v1482_v57 }
 0x4bd   : > { %v1988_v24 = vadd.f32 %v1972_v60, %v1940_v16 }
 0x4be   : > { %v1484_v4 = vmul.f32 %v2716_v5, %v1483_v14 }
 0x4bf   : > { %2004 = vst [vmem:[#allocation2 + $0x78] sm:$0xff] %v1988_v24 }
 0x4c0   : > { %2020 = vst [vmem:[%s3232_s16 + $0x70] sm:$0xff] %v1988_v24  ;;  %v1488_v2 = vsel %vm1487_vm15, %v2716_v5, %v1484_v4 }
 0x4c1   : > { %v1504_v58 = vmul.f32 %v1488_v2, %v3445_v51 }
 0x4c3   : > { %v1941_v23 = vmul.f32 %v1924_v19, %v1504_v58 }
 0x4c5   : > { %v1989_v39 = vadd.f32 %v1973_v6, %v1941_v23 }
 0x4c7   : > { %2005 = vst [vmem:[#allocation2 + $0x28] sm:$0xff] %v1989_v39 }
 0x4c8   : > { %2021 = vst [vmem:[%s3232_s16 + $0x78] sm:$0xff] %v1989_v39 }
 0x4c9   : > { %2940 = shalt.err (!%p2937_p12)
}
 0x4ca   : > { %s3001_s18 = smov 128   ;;  %s3002_s11 = smov 8  }
 0x4cb   : > { %2542 = dma.vmem_to_hbm [thread:$0]  (%p3119_p7), %s2036_s3, 2048, %s2038_s21, %s2023_s28, %s3001_s18, %s3001_s18, %s3002_s11  }
 0x4cc PF: > { %p2577_p9 = scmp.ge.s32.totalorder %s2991_s27, 2  ;;  %s2052_s26 = sand.u32 1, %s2979_s24  }
 0x4cd   : > { %s2053_s12 = scalar_lea.sflag [#allocation5], %s2052_s26 }
 0x4ce   : > { %p2565_p2 = pnand %p2577_p9, %p3078_p6 }
 0x4d0   : > { %p2566_p1 = pneg %p2565_p2 }
 0x4d2   : > { %2974 = dma.done.wait (%p2566_p1), %s2053_s12, 2048  }
 0x4d3   : > { %2976 = vsyncadd (%p2566_p1), %s2053_s12, 4294965248  ;;  %s4128_s27 = sld [smem:[#allocation22_spill]]  ;;  %s4131_s24 = smov %s2983_s25 }
 0x4d4   : > { %s4129_s16 = sld [smem:[#allocation20_spill]] }
 0x4d5   : > { %s4130_s26 = sld [smem:[#allocation23_spill]] }
 0x4d9   : > { %p23_p8 = scmp.ge.s32.totalorder %s4128_s27, 5  }
 0x4da   : > { %s4132_s25 = smov %s4129_s16 }
 0x4db   :  { %25 = sbr.rel (!%p23_p8) target bundleno = 12 (0xc), region = 127 }
 0x4e0   :  { %2059 = vsyncpa [#allocation4], 1 }
 0x4e1   :  { %2061 = vsyncpa [#allocation4 + $0x1], 1 }
 0x4e2   :  { %2062 = vsyncpa [#allocation7], 1 }
 0x4e3   :  { %2064 = vsyncpa [#allocation7 + $0x1], 1 }
 0x4e4   :  { %2065 = vsyncpa [#allocation10], 1 }
 0x4e5   :  { %2066 = vsyncpa [#allocation13], 1 }
 0x4e6   :  { %2067 = vsyncpa [#allocation5], 1 }
 0x4e7   :  { %2069 = vsyncpa [#allocation5 + $0x1], 1 }

</bundles_post_ra>
